<compile_context>
chip_gen: v6e
topology: v6e:2x2x1
jax: 0.10.0
libtpu: 0.0.40
codegen_flags: <defaults>
</compile_context>

<pallas_src>
import math
import functools

import jax
import jax.numpy as jnp
from jax import lax
from jax.experimental import pallas as pl
from jax.experimental.pallas import tpu as pltpu


def _modconv_kernel(smod_ref, demod_ref, wtap_ref, xpad_ref, out_ref, acc_ref,
                    *, K, H, W, compute_dtype):
    """One (batch, O-tile) grid step.

    smod_ref : (1, I, 1)      f32            per-sample per-input-channel modulation
    demod_ref: (1, TO, 1)     f32            per-sample per-output-channel demodulation
    wtap_ref : (K*K, TO, I)   compute_dtype  shared (sample-invariant) conv weight taps
    xpad_ref : (1, I, Hp, Wp) compute_dtype  zero-padded input for this sample
    out_ref  : (1, TO, H*W)   f32            lane-dense flattened output
    acc_ref  : (TO, H*W)      f32            VMEM accumulator scratch
    """
    HW = H * W

    # --- input modulation (VPU, f32), then cast operands for the MXU ---
    smod = smod_ref[0]                                       # (I, 1)
    x = xpad_ref[0].astype(jnp.float32)                      # (I, Hp, Wp)
    xm = (x * smod[:, :, None]).astype(compute_dtype)        # (I, Hp, Wp)

    # --- K*K shifted-slab MXU matmuls: acc += w_tap (TO, I) @ xs (I, H*W) ---
    for ky in range(K):
        for kx in range(K):
            tap = ky * K + kx
            xs = xm[:, ky:ky + H, kx:kx + W].reshape(xm.shape[0], HW)   # (I, H*W)
            part = jnp.dot(wtap_ref[tap], xs,
                           preferred_element_type=jnp.float32)          # (TO, H*W)
            if tap == 0:
                acc_ref[...] = part
            else:
                acc_ref[...] += part

    # --- demodulate output rows and store lane-dense ---
    demod = demod_ref[0]                                     # (TO, 1)
    out_ref[0] = (acc_ref[...] * demod).astype(out_ref.dtype)


def modulated_conv2d(x, style, weight, mod_weight, mod_bias, *,
                     kernel_size, demodulate=True, eps=1e-8, lr_mul=1.0,
                     compute_dtype=jnp.bfloat16, o_tile=None):
    """x: (B, I, H, W); style: (B, S); weight: (1, O, I, K, K);
    mod_weight: (I, S) (EqualLinear raw weight); mod_bias: (I,)."""
    B, I, H, W = x.shape
    S = style.shape[1]
    O = weight.shape[1]
    K = kernel_size
    p = K // 2
    Hp, Wp = H + 2 * p, W + 2 * p
    HW = H * W

    # ---- O tiling (keeps VMEM blocks bounded and gives a second parallel grid axis)
    if o_tile is None:
        o_tile = O if O <= 256 else 256
    assert O % o_tile == 0 and (o_tile == O or o_tile % 8 == 0)
    n_ot = O // o_tile

    # ---- EqualLinear modulation + demodulation, hoisted to XLA (batched) ----
    scale = (1.0 / math.sqrt(S)) * lr_mul
    smod = (style.astype(jnp.float32) @ (mod_weight.astype(jnp.float32) * scale).T
            + mod_bias.astype(jnp.float32) * lr_mul)                      # (B, I)
    w_oik = weight.reshape(O, I, K * K).astype(jnp.float32)               # (O, I, KK)
    if demodulate:
        wsq = jnp.sum(w_oik * w_oik, axis=-1)                             # (O, I)
        demod = lax.rsqrt(
            jnp.einsum("bi,oi->bo", smod * smod, wsq,
                       precision=lax.Precision.HIGHEST) + eps)            # (B, O)
    else:
        demod = jnp.ones((B, O), jnp.float32)

    # ---- sample-invariant per-tap weight: (K*K, O, I), MXU dtype ----
    wtap = jnp.transpose(weight.reshape(O, I, K, K), (2, 3, 0, 1)).reshape(K * K, O, I)
    wtap = wtap.astype(compute_dtype)

    # ---- pad the input once (K//2 halo); big operand in MXU dtype ----
    xpad = jnp.pad(x.astype(jnp.float32),
                   ((0, 0), (0, 0), (p, p), (p, p))).astype(compute_dtype)

    smod3 = smod[:, :, None]       # (B, I, 1)  f32
    demod3 = demod[:, :, None]     # (B, O, 1)  f32

    kernel = functools.partial(_modconv_kernel, K=K, H=H, W=W,
                               compute_dtype=compute_dtype)

    # explicit VMEM budget with headroom (double-buffered inputs/output + scratch)
    isz = jnp.dtype(compute_dtype).itemsize
    vmem_need = (2 * (I * Hp * Wp * isz            # xpad block
                      + o_tile * HW * 4            # output block
                      + K * K * o_tile * I * isz   # weight taps
                      + (I + o_tile) * 4)          # smod / demod
                 + o_tile * HW * 4)                # accumulator scratch
    vmem_limit = int(min(max(2 * vmem_need, 32 * 1024 * 1024), 96 * 1024 * 1024))

    out_flat = pl.pallas_call(
        kernel,
        out_shape=jax.ShapeDtypeStruct((B, O, HW), jnp.float32),
        grid=(B, n_ot),
        in_specs=[
            pl.BlockSpec((1, I, 1), lambda b, ot: (b, 0, 0)),             # smod
            pl.BlockSpec((1, o_tile, 1), lambda b, ot: (b, ot, 0)),       # demod
            pl.BlockSpec((K * K, o_tile, I), lambda b, ot: (0, ot, 0)),   # weight taps
            pl.BlockSpec((1, I, Hp, Wp), lambda b, ot: (b, 0, 0, 0)),     # padded input
        ],
        out_specs=pl.BlockSpec((1, o_tile, HW), lambda b, ot: (b, ot, 0)),
        scratch_shapes=[pltpu.VMEM((o_tile, HW), jnp.float32)],
        compiler_params=pltpu.CompilerParams(
            dimension_semantics=("parallel", "parallel"),
            vmem_limit_bytes=vmem_limit),
    )(smod3, demod3, wtap, xpad)

    return out_flat.reshape(B, O, H, W)


def _reference(x, style, weight, mod_weight, mod_bias, *, kernel_size,
               demodulate=True, eps=1e-8, lr_mul=1.0):
    """Pure-JAX reference reproducing the PyTorch forward (no up/down-sample)."""
    B, I, H, W = x.shape
    S = style.shape[1]
    O = weight.shape[1]
    K = kernel_size
    scale = (1.0 / math.sqrt(S)) * lr_mul
    smod = style @ (mod_weight * scale).T + mod_bias * lr_mul             # (B, I)
    w = weight * smod.reshape(B, 1, I, 1, 1)                              # (B, O, I, K, K)
    if demodulate:
        demod = lax.rsqrt(jnp.sum(w * w, axis=(2, 3, 4)) + eps)           # (B, O)
        w = w * demod.reshape(B, O, 1, 1, 1)
    outs = []
    for b in range(B):
        outs.append(lax.conv_general_dilated(
            x[b:b + 1], w[b], window_strides=(1, 1),
            padding=[(K // 2, K // 2)] * 2,
            dimension_numbers=('NCHW', 'OIHW', 'NCHW')))
    return jnp.concatenate(outs, axis=0)


if __name__ == "__main__":
    B, in_channel, out_channel, K, style_dim, H, W = 2, 4, 8, 3, 16, 16, 16

    key = jax.random.PRNGKey(0)
    k1, k2, k3, k4 = jax.random.split(key, 4)

    # Module parameters (deterministic, matching PyTorch __init__ shapes).
    weight = jax.random.normal(k1, (1, out_channel, in_channel, K, K), jnp.float32)
    mod_weight = jax.random.normal(k2, (in_channel, style_dim), jnp.float32)
    mod_bias = jnp.ones((in_channel,), jnp.float32)                       # bias_init = 1

    # Inputs.
    x = jax.random.normal(k3, (B, in_channel, H, W), jnp.float32)
    style = jax.random.normal(k4, (B, style_dim), jnp.float32)

    ref = _reference(x, style, weight, mod_weight, mod_bias,
                     kernel_size=K, demodulate=True)

    # f32 MXU path: tight check of the semantics.
    out_f32 = modulated_conv2d(x, style, weight, mod_weight, mod_bias,
                               kernel_size=K, demodulate=True,
                               compute_dtype=jnp.float32)
    out_f32 = jax.block_until_ready(out_f32)
    assert out_f32.shape == (B, out_channel, H, W)
    assert jnp.allclose(out_f32, ref, rtol=1e-3, atol=1e-3), \
        f"f32 max abs err {jnp.max(jnp.abs(out_f32 - ref))}"

    # bf16 MXU operands (default, fastest): relaxed tolerance.
    out_bf16 = modulated_conv2d(x, style, weight, mod_weight, mod_bias,
                                kernel_size=K, demodulate=True)
    out_bf16 = jax.block_until_ready(out_bf16)
    assert out_bf16.shape == (B, out_channel, H, W)
    assert jnp.allclose(out_bf16, ref, rtol=5e-2, atol=5e-2), \
        f"bf16 max abs err {jnp.max(jnp.abs(out_bf16 - ref))}"

    print("KERNEL_OK")
</pallas_src>

<mosaic_0001>
module attributes {stable_mosaic.version = 11 : i64} {
  func.func @_modconv_kernel(%arg0: i32, %arg1: i32, %arg2: memref<1x4x1xf32, #tpu.memory_space<vmem>>, %arg3: memref<1x8x1xf32, #tpu.memory_space<vmem>>, %arg4: memref<9x8x4xf32, #tpu.memory_space<vmem>>, %arg5: memref<1x4x18x18xf32, #tpu.memory_space<vmem>>, %arg6: memref<1x8x256xf32, #tpu.memory_space<vmem>>, %arg7: memref<8x256xf32, #tpu.memory_space<vmem>>) attributes {dimension_semantics = [#tpu.dimension_semantics<parallel>, #tpu.dimension_semantics<parallel>], iteration_bounds = array<i64: 2, 1>, scalar_prefetch = 0 : i64, scratch_operands = 1 : i64, tpu.core_type = #tpu.core_type<tc>, window_params = [{transform_indices = @transform_0, window_bounds = array<i64: 1, 4, 1>}, {transform_indices = @transform_1, window_bounds = array<i64: 1, 8, 1>}, {transform_indices = @transform_2, window_bounds = array<i64: 9, 8, 4>}, {transform_indices = @transform_3, window_bounds = array<i64: 1, 4, 18, 18>}, {transform_indices = @transform_4, window_bounds = array<i64: 1, 8, 256>}]} {
    %c0 = arith.constant 0 : index
    %c0_0 = arith.constant 0 : index
    %c0_1 = arith.constant 0 : index
    %0 = vector.load %arg2[%c0, %c0_0, %c0_1] : memref<1x4x1xf32, #tpu.memory_space<vmem>>, vector<1x4x1xf32>
    %1 = vector.shape_cast %0 : vector<1x4x1xf32> to vector<4x1xf32>
    %c0_2 = arith.constant 0 : index
    %c0_3 = arith.constant 0 : index
    %c0_4 = arith.constant 0 : index
    %c0_5 = arith.constant 0 : index
    %2 = vector.load %arg5[%c0_2, %c0_3, %c0_4, %c0_5] : memref<1x4x18x18xf32, #tpu.memory_space<vmem>>, vector<1x4x18x18xf32>
    %3 = vector.shape_cast %2 : vector<1x4x18x18xf32> to vector<4x18x18xf32>
    %4 = vector.shape_cast %1 : vector<4x1xf32> to vector<4x1x1xf32>
    %5 = vector.broadcast %4 : vector<4x1x1xf32> to vector<4x18x18xf32>
    %6 = arith.mulf %3, %5 : vector<4x18x18xf32>
    %7 = vector.extract_strided_slice %6 {offsets = [0, 0, 0], sizes = [4, 16, 16], strides = [1, 1, 1]} : vector<4x18x18xf32> to vector<4x16x16xf32>
    %8 = vector.shape_cast %7 : vector<4x16x16xf32> to vector<4x256xf32>
    %c0_6 = arith.constant 0 : index
    %c0_7 = arith.constant 0 : index
    %c0_8 = arith.constant 0 : index
    %9 = vector.load %arg4[%c0_6, %c0_7, %c0_8] : memref<9x8x4xf32, #tpu.memory_space<vmem>>, vector<1x8x4xf32>
    %10 = vector.shape_cast %9 : vector<1x8x4xf32> to vector<8x4xf32>
    %cst = arith.constant dense<0.000000e+00> : vector<8x256xf32>
    %11 = tpu.matmul %10, %8, %cst {dimension_numbers = #tpu.dot_dimension_numbers<[1], [0], [0], [1], [0, 0, 1, 1], [], []>} : vector<8x4xf32>, vector<4x256xf32>, vector<8x256xf32> -> vector<8x256xf32>
    %c0_9 = arith.constant 0 : index
    %c0_10 = arith.constant 0 : index
    %12 = vector.load %arg7[%c0_9, %c0_10] : memref<8x256xf32, #tpu.memory_space<vmem>>, vector<8x256xf32>
    tpu.vector_store %arg7[%c0_9, %c0_10], %11 {strides = array<i32>} : memref<8x256xf32, #tpu.memory_space<vmem>>, vector<8x256xf32>,
    %13 = vector.extract_strided_slice %6 {offsets = [0, 0, 1], sizes = [4, 16, 16], strides = [1, 1, 1]} : vector<4x18x18xf32> to vector<4x16x16xf32>
    %14 = vector.shape_cast %13 : vector<4x16x16xf32> to vector<4x256xf32>
    %c1 = arith.constant 1 : index
    %c0_11 = arith.constant 0 : index
    %c0_12 = arith.constant 0 : index
    %15 = vector.load %arg4[%c1, %c0_11, %c0_12] : memref<9x8x4xf32, #tpu.memory_space<vmem>>, vector<1x8x4xf32>
    %16 = vector.shape_cast %15 : vector<1x8x4xf32> to vector<8x4xf32>
    %cst_13 = arith.constant dense<0.000000e+00> : vector<8x256xf32>
    %17 = tpu.matmul %16, %14, %cst_13 {dimension_numbers = #tpu.dot_dimension_numbers<[1], [0], [0], [1], [0, 0, 1, 1], [], []>} : vector<8x4xf32>, vector<4x256xf32>, vector<8x256xf32> -> vector<8x256xf32>
    %c0_14 = arith.constant 0 : index
    %c0_15 = arith.constant 0 : index
    %18 = vector.load %arg7[%c0_14, %c0_15] : memref<8x256xf32, #tpu.memory_space<vmem>>, vector<8x256xf32>
    %19 = arith.addf %18, %17 : vector<8x256xf32>
    %c0_16 = arith.constant 0 : index
    %c0_17 = arith.constant 0 : index
    %20 = vector.load %arg7[%c0_16, %c0_17] : memref<8x256xf32, #tpu.memory_space<vmem>>, vector<8x256xf32>
    tpu.vector_store %arg7[%c0_16, %c0_17], %19 {strides = array<i32>} : memref<8x256xf32, #tpu.memory_space<vmem>>, vector<8x256xf32>,
    %21 = vector.extract_strided_slice %6 {offsets = [0, 0, 2], sizes = [4, 16, 16], strides = [1, 1, 1]} : vector<4x18x18xf32> to vector<4x16x16xf32>
    %22 = vector.shape_cast %21 : vector<4x16x16xf32> to vector<4x256xf32>
    %c2 = arith.constant 2 : index
    %c0_18 = arith.constant 0 : index
    %c0_19 = arith.constant 0 : index
    %23 = vector.load %arg4[%c2, %c0_18, %c0_19] : memref<9x8x4xf32, #tpu.memory_space<vmem>>, vector<1x8x4xf32>
    %24 = vector.shape_cast %23 : vector<1x8x4xf32> to vector<8x4xf32>
    %cst_20 = arith.constant dense<0.000000e+00> : vector<8x256xf32>
    %25 = tpu.matmul %24, %22, %cst_20 {dimension_numbers = #tpu.dot_dimension_numbers<[1], [0], [0], [1], [0, 0, 1, 1], [], []>} : vector<8x4xf32>, vector<4x256xf32>, vector<8x256xf32> -> vector<8x256xf32>
    %c0_21 = arith.constant 0 : index
    %c0_22 = arith.constant 0 : index
    %26 = vector.load %arg7[%c0_21, %c0_22] : memref<8x256xf32, #tpu.memory_space<vmem>>, vector<8x256xf32>
    %27 = arith.addf %26, %25 : vector<8x256xf32>
    %c0_23 = arith.constant 0 : index
    %c0_24 = arith.constant 0 : index
    %28 = vector.load %arg7[%c0_23, %c0_24] : memref<8x256xf32, #tpu.memory_space<vmem>>, vector<8x256xf32>
    tpu.vector_store %arg7[%c0_23, %c0_24], %27 {strides = array<i32>} : memref<8x256xf32, #tpu.memory_space<vmem>>, vector<8x256xf32>,
    %29 = vector.extract_strided_slice %6 {offsets = [0, 1, 0], sizes = [4, 16, 16], strides = [1, 1, 1]} : vector<4x18x18xf32> to vector<4x16x16xf32>
    %30 = vector.shape_cast %29 : vector<4x16x16xf32> to vector<4x256xf32>
    %c3 = arith.constant 3 : index
    %c0_25 = arith.constant 0 : index
    %c0_26 = arith.constant 0 : index
    %31 = vector.load %arg4[%c3, %c0_25, %c0_26] : memref<9x8x4xf32, #tpu.memory_space<vmem>>, vector<1x8x4xf32>
    %32 = vector.shape_cast %31 : vector<1x8x4xf32> to vector<8x4xf32>
    %cst_27 = arith.constant dense<0.000000e+00> : vector<8x256xf32>
    %33 = tpu.matmul %32, %30, %cst_27 {dimension_numbers = #tpu.dot_dimension_numbers<[1], [0], [0], [1], [0, 0, 1, 1], [], []>} : vector<8x4xf32>, vector<4x256xf32>, vector<8x256xf32> -> vector<8x256xf32>
    %c0_28 = arith.constant 0 : index
    %c0_29 = arith.constant 0 : index
    %34 = vector.load %arg7[%c0_28, %c0_29] : memref<8x256xf32, #tpu.memory_space<vmem>>, vector<8x256xf32>
    %35 = arith.addf %34, %33 : vector<8x256xf32>
    %c0_30 = arith.constant 0 : index
    %c0_31 = arith.constant 0 : index
    %36 = vector.load %arg7[%c0_30, %c0_31] : memref<8x256xf32, #tpu.memory_space<vmem>>, vector<8x256xf32>
    tpu.vector_store %arg7[%c0_30, %c0_31], %35 {strides = array<i32>} : memref<8x256xf32, #tpu.memory_space<vmem>>, vector<8x256xf32>,
    %37 = vector.extract_strided_slice %6 {offsets = [0, 1, 1], sizes = [4, 16, 16], strides = [1, 1, 1]} : vector<4x18x18xf32> to vector<4x16x16xf32>
    %38 = vector.shape_cast %37 : vector<4x16x16xf32> to vector<4x256xf32>
    %c4 = arith.constant 4 : index
    %c0_32 = arith.constant 0 : index
    %c0_33 = arith.constant 0 : index
    %39 = vector.load %arg4[%c4, %c0_32, %c0_33] : memref<9x8x4xf32, #tpu.memory_space<vmem>>, vector<1x8x4xf32>
    %40 = vector.shape_cast %39 : vector<1x8x4xf32> to vector<8x4xf32>
    %cst_34 = arith.constant dense<0.000000e+00> : vector<8x256xf32>
    %41 = tpu.matmul %40, %38, %cst_34 {dimension_numbers = #tpu.dot_dimension_numbers<[1], [0], [0], [1], [0, 0, 1, 1], [], []>} : vector<8x4xf32>, vector<4x256xf32>, vector<8x256xf32> -> vector<8x256xf32>
    %c0_35 = arith.constant 0 : index
    %c0_36 = arith.constant 0 : index
    %42 = vector.load %arg7[%c0_35, %c0_36] : memref<8x256xf32, #tpu.memory_space<vmem>>, vector<8x256xf32>
    %43 = arith.addf %42, %41 : vector<8x256xf32>
    %c0_37 = arith.constant 0 : index
    %c0_38 = arith.constant 0 : index
    %44 = vector.load %arg7[%c0_37, %c0_38] : memref<8x256xf32, #tpu.memory_space<vmem>>, vector<8x256xf32>
    tpu.vector_store %arg7[%c0_37, %c0_38], %43 {strides = array<i32>} : memref<8x256xf32, #tpu.memory_space<vmem>>, vector<8x256xf32>,
    %45 = vector.extract_strided_slice %6 {offsets = [0, 1, 2], sizes = [4, 16, 16], strides = [1, 1, 1]} : vector<4x18x18xf32> to vector<4x16x16xf32>
    %46 = vector.shape_cast %45 : vector<4x16x16xf32> to vector<4x256xf32>
    %c5 = arith.constant 5 : index
    %c0_39 = arith.constant 0 : index
    %c0_40 = arith.constant 0 : index
    %47 = vector.load %arg4[%c5, %c0_39, %c0_40] : memref<9x8x4xf32, #tpu.memory_space<vmem>>, vector<1x8x4xf32>
    %48 = vector.shape_cast %47 : vector<1x8x4xf32> to vector<8x4xf32>
    %cst_41 = arith.constant dense<0.000000e+00> : vector<8x256xf32>
    %49 = tpu.matmul %48, %46, %cst_41 {dimension_numbers = #tpu.dot_dimension_numbers<[1], [0], [0], [1], [0, 0, 1, 1], [], []>} : vector<8x4xf32>, vector<4x256xf32>, vector<8x256xf32> -> vector<8x256xf32>
    %c0_42 = arith.constant 0 : index
    %c0_43 = arith.constant 0 : index
    %50 = vector.load %arg7[%c0_42, %c0_43] : memref<8x256xf32, #tpu.memory_space<vmem>>, vector<8x256xf32>
    %51 = arith.addf %50, %49 : vector<8x256xf32>
    %c0_44 = arith.constant 0 : index
    %c0_45 = arith.constant 0 : index
    %52 = vector.load %arg7[%c0_44, %c0_45] : memref<8x256xf32, #tpu.memory_space<vmem>>, vector<8x256xf32>
    tpu.vector_store %arg7[%c0_44, %c0_45], %51 {strides = array<i32>} : memref<8x256xf32, #tpu.memory_space<vmem>>, vector<8x256xf32>,
    %53 = vector.extract_strided_slice %6 {offsets = [0, 2, 0], sizes = [4, 16, 16], strides = [1, 1, 1]} : vector<4x18x18xf32> to vector<4x16x16xf32>
    %54 = vector.shape_cast %53 : vector<4x16x16xf32> to vector<4x256xf32>
    %c6 = arith.constant 6 : index
    %c0_46 = arith.constant 0 : index
    %c0_47 = arith.constant 0 : index
    %55 = vector.load %arg4[%c6, %c0_46, %c0_47] : memref<9x8x4xf32, #tpu.memory_space<vmem>>, vector<1x8x4xf32>
    %56 = vector.shape_cast %55 : vector<1x8x4xf32> to vector<8x4xf32>
    %cst_48 = arith.constant dense<0.000000e+00> : vector<8x256xf32>
    %57 = tpu.matmul %56, %54, %cst_48 {dimension_numbers = #tpu.dot_dimension_numbers<[1], [0], [0], [1], [0, 0, 1, 1], [], []>} : vector<8x4xf32>, vector<4x256xf32>, vector<8x256xf32> -> vector<8x256xf32>
    %c0_49 = arith.constant 0 : index
    %c0_50 = arith.constant 0 : index
    %58 = vector.load %arg7[%c0_49, %c0_50] : memref<8x256xf32, #tpu.memory_space<vmem>>, vector<8x256xf32>
    %59 = arith.addf %58, %57 : vector<8x256xf32>
    %c0_51 = arith.constant 0 : index
    %c0_52 = arith.constant 0 : index
    %60 = vector.load %arg7[%c0_51, %c0_52] : memref<8x256xf32, #tpu.memory_space<vmem>>, vector<8x256xf32>
    tpu.vector_store %arg7[%c0_51, %c0_52], %59 {strides = array<i32>} : memref<8x256xf32, #tpu.memory_space<vmem>>, vector<8x256xf32>,
    %61 = vector.extract_strided_slice %6 {offsets = [0, 2, 1], sizes = [4, 16, 16], strides = [1, 1, 1]} : vector<4x18x18xf32> to vector<4x16x16xf32>
    %62 = vector.shape_cast %61 : vector<4x16x16xf32> to vector<4x256xf32>
    %c7 = arith.constant 7 : index
    %c0_53 = arith.constant 0 : index
    %c0_54 = arith.constant 0 : index
    %63 = vector.load %arg4[%c7, %c0_53, %c0_54] : memref<9x8x4xf32, #tpu.memory_space<vmem>>, vector<1x8x4xf32>
    %64 = vector.shape_cast %63 : vector<1x8x4xf32> to vector<8x4xf32>
    %cst_55 = arith.constant dense<0.000000e+00> : vector<8x256xf32>
    %65 = tpu.matmul %64, %62, %cst_55 {dimension_numbers = #tpu.dot_dimension_numbers<[1], [0], [0], [1], [0, 0, 1, 1], [], []>} : vector<8x4xf32>, vector<4x256xf32>, vector<8x256xf32> -> vector<8x256xf32>
    %c0_56 = arith.constant 0 : index
    %c0_57 = arith.constant 0 : index
    %66 = vector.load %arg7[%c0_56, %c0_57] : memref<8x256xf32, #tpu.memory_space<vmem>>, vector<8x256xf32>
    %67 = arith.addf %66, %65 : vector<8x256xf32>
    %c0_58 = arith.constant 0 : index
    %c0_59 = arith.constant 0 : index
    %68 = vector.load %arg7[%c0_58, %c0_59] : memref<8x256xf32, #tpu.memory_space<vmem>>, vector<8x256xf32>
    tpu.vector_store %arg7[%c0_58, %c0_59], %67 {strides = array<i32>} : memref<8x256xf32, #tpu.memory_space<vmem>>, vector<8x256xf32>,
    %69 = vector.extract_strided_slice %6 {offsets = [0, 2, 2], sizes = [4, 16, 16], strides = [1, 1, 1]} : vector<4x18x18xf32> to vector<4x16x16xf32>
    %70 = vector.shape_cast %69 : vector<4x16x16xf32> to vector<4x256xf32>
    %c8 = arith.constant 8 : index
    %c0_60 = arith.constant 0 : index
    %c0_61 = arith.constant 0 : index
    %71 = vector.load %arg4[%c8, %c0_60, %c0_61] : memref<9x8x4xf32, #tpu.memory_space<vmem>>, vector<1x8x4xf32>
    %72 = vector.shape_cast %71 : vector<1x8x4xf32> to vector<8x4xf32>
    %cst_62 = arith.constant dense<0.000000e+00> : vector<8x256xf32>
    %73 = tpu.matmul %72, %70, %cst_62 {dimension_numbers = #tpu.dot_dimension_numbers<[1], [0], [0], [1], [0, 0, 1, 1], [], []>} : vector<8x4xf32>, vector<4x256xf32>, vector<8x256xf32> -> vector<8x256xf32>
    %c0_63 = arith.constant 0 : index
    %c0_64 = arith.constant 0 : index
    %74 = vector.load %arg7[%c0_63, %c0_64] : memref<8x256xf32, #tpu.memory_space<vmem>>, vector<8x256xf32>
    %75 = arith.addf %74, %73 : vector<8x256xf32>
    %c0_65 = arith.constant 0 : index
    %c0_66 = arith.constant 0 : index
    %76 = vector.load %arg7[%c0_65, %c0_66] : memref<8x256xf32, #tpu.memory_space<vmem>>, vector<8x256xf32>
    tpu.vector_store %arg7[%c0_65, %c0_66], %75 {strides = array<i32>} : memref<8x256xf32, #tpu.memory_space<vmem>>, vector<8x256xf32>,
    %c0_67 = arith.constant 0 : index
    %c0_68 = arith.constant 0 : index
    %c0_69 = arith.constant 0 : index
    %77 = vector.load %arg3[%c0_67, %c0_68, %c0_69] : memref<1x8x1xf32, #tpu.memory_space<vmem>>, vector<1x8x1xf32>
    %78 = vector.shape_cast %77 : vector<1x8x1xf32> to vector<8x1xf32>
    %c0_70 = arith.constant 0 : index
    %c0_71 = arith.constant 0 : index
    %79 = vector.load %arg7[%c0_70, %c0_71] : memref<8x256xf32, #tpu.memory_space<vmem>>, vector<8x256xf32>
    %80 = vector.broadcast %78 : vector<8x1xf32> to vector<8x256xf32>
    %81 = arith.mulf %79, %80 : vector<8x256xf32>
    %c0_72 = arith.constant 0 : index
    %c0_73 = arith.constant 0 : index
    %c0_74 = arith.constant 0 : index
    %82 = vector.load %arg6[%c0_72, %c0_73, %c0_74] : memref<1x8x256xf32, #tpu.memory_space<vmem>>, vector<1x8x256xf32>
    %83 = vector.shape_cast %82 : vector<1x8x256xf32> to vector<8x256xf32>
    %84 = vector.shape_cast %81 : vector<8x256xf32> to vector<1x8x256xf32>
    tpu.vector_store %arg6[%c0_72, %c0_73, %c0_74], %84 {strides = array<i32>} : memref<1x8x256xf32, #tpu.memory_space<vmem>>, vector<1x8x256xf32>,
    return
  }
  func.func @transform_0(%arg0: i32, %arg1: i32) -> (i32, i32, i32) {
    %c0_i32 = arith.constant 0 : i32
    %c0_i32_0 = arith.constant 0 : i32
    %c0_i32_1 = arith.constant 0 : i32
    return %arg0, %c0_i32, %c0_i32_0 : i32, i32, i32
  }
  func.func @transform_1(%arg0: i32, %arg1: i32) -> (i32, i32, i32) {
    %c0_i32 = arith.constant 0 : i32
    %c0_i32_0 = arith.constant 0 : i32
    return %arg0, %arg1, %c0_i32 : i32, i32, i32
  }
  func.func @transform_2(%arg0: i32, %arg1: i32) -> (i32, i32, i32) {
    %c0_i32 = arith.constant 0 : i32
    %c0_i32_0 = arith.constant 0 : i32
    %c0_i32_1 = arith.constant 0 : i32
    return %c0_i32, %arg1, %c0_i32_0 : i32, i32, i32
  }
  func.func @transform_3(%arg0: i32, %arg1: i32) -> (i32, i32, i32, i32) {
    %c0_i32 = arith.constant 0 : i32
    %c0_i32_0 = arith.constant 0 : i32
    %c0_i32_1 = arith.constant 0 : i32
    %c0_i32_2 = arith.constant 0 : i32
    return %arg0, %c0_i32, %c0_i32_0, %c0_i32_1 : i32, i32, i32, i32
  }
  func.func @transform_4(%arg0: i32, %arg1: i32) -> (i32, i32, i32) {
    %c0_i32 = arith.constant 0 : i32
    %c0_i32_0 = arith.constant 0 : i32
    return %arg0, %arg1, %c0_i32 : i32, i32, i32
  }
}

</mosaic_0001>

<bundles_post_ra>
// kernel: tpu_custom_call.1
= control target key start
LH: loop header
LB: loop body
LE: loop exit
PB: predicated region body
PF: predicated region fallthrough
CT: control target
= control target key end

     0   :  { %9 = vsyncpa [#allocation4], 0  ;;  %s5175_s0 = inlined_call_operand.vmem [shape: f32[2,4,1], index: 0, kind: input, shape index: {}]   ;;  %s5176_s1 = inlined_call_operand.vmem [shape: f32[2,8,1], index: 1, kind: input, shape index: {}]   ;;  %s5177_s2 = inlined_call_operand.vmem [shape: f32[9,8,4], index: 2, kind: input, shape index: {}]   ;;  %s5178_s3 = inlined_call_operand.vmem [shape: f32[2,4,18,18], index: 3, kind: input, shape index: {}]   ;;  %s5179_s4 = inlined_call_operand.hbm [shape: f32[2,8,256], index: 4, kind: output, shape index: {}]  }
   0x1   :  { %11 = vsyncpa [#allocation4 + $0x1], 0  ;;  %s3601_s15 = smov 0   ;;  %s3603_s16 = smov 0  }
   0x2   :  { %s3605_s17 = smov 0   ;;  %s3607_s18 = smov 0  }
   0x3   :  { %s3609_s19 = smov 0   ;;  %s3611_s20 = smov 0  }
   0x4 LB: > { %s3359_s21 = sadd.s32 4294967295, %s3559_s20   ;;  %s3360_s22 = sadd.s32 4294967294, %s3559_s20   ;;  %s3559_s20 = sphi %s3611_s20, %s17_s20   ;;  %s3555_s19 = sphi %s3609_s19, %s5236_s19   ;;  %s3551_s18 = sphi %s3607_s18, %s5235_s18   ;;  %s3547_s17 = sphi %s3605_s17, %s5234_s17   ;;  %s3543_s16 = sphi %s3603_s16, %s5233_s16   ;;  %s3539_s15 = sphi %s3601_s15, %s5232_s15  }
   0x5   : > { %s29_s23 = sadd.s32 1, %s3555_s19  ;;  %s144_s24 = sadd.s32 1, %s3547_s17 }
   0x6   : > { %p31_p0 = scmp.ge.s32.totalorder %s29_s23, 2  ;;  %p154_p1 = scmp.ne.s32.totalorder %s3547_s17, %s3543_s16 }
   0x7   : > { %p155_p2 = scmp.eq.s32.totalorder %s3359_s21, 1  ;;  %p160_p3 = scmp.ne.s32.totalorder %s3543_s16, %s3539_s15 }
   0x8   : > { %s5238_s23 = smov (%p31_p0, %s29_s23), 0  ;;  %p161_p5 = scmp.eq.s32.totalorder %s3360_s22, 1 }
   0x9   : > { %p3641_p4 = por %p155_p2, %p154_p1  ;;  %s139_s26 = ssub.s32 %s3555_s19, %s5238_s23 }
   0xa   : > { %p3364_p6 = scmp.ge.s32.totalorder %s3559_s20, 1  ;;  %p142_p7 = scmp.eq.s32.totalorder %s139_s26, 0 }
   0xb   : > { %p3648_p8 = por %p161_p5, %p160_p3  ;;  %p211_p9 = scmp.lt.s32.totalorder %s3559_s20, 3 }
   0xc   : > { %s3654_s28 = scalar_select %p142_p7, %s3547_s17, %s144_s24  }
   0xd   : > { %p212_p10 = pnand %p3364_p6, %p211_p9 }
   0xf   : > { %215 = sbr.rel (%p212_p10) target bundleno = 835 (0x343), region = 36 }
  0x14   : > { %p252_p11 = scmp.lt.s32.totalorder %s3551_s18, 1  ;;  %v297_v0 = vlaneseq  ;;  %v3561_v1 = vmov 0   ;;  %v3562_v2 = vmov 1966171168   ;;  %v5184_v18 = vmov 0.0   ;;  %s3564_s12 = smov 127  }
  0x15   : > { %3481 = vset.pattern.permute.xlu0 %v3561_v1  ;;  %v295_v3 = vunpack.c.l.s4 %v3562_v2  ;;  %3482 = vset.pattern.permute.xlu1 %v3561_v1  ;;  %v3565_v37 = vmov 1983009808   ;;  %s3566_s13 = smov 126   ;;  %vm1300_vm0 = vcmask 1046528   ;;  %vm2259_vm1 = vcmask 1045504   ;;  %s3568_s14 = smov 64  }
  0x16   : > { %s3658_s29 = scalar_select %p252_p11, %s3551_s18, 1  ;;  %v3660_v4 = vshrl.u32 %v297_v0, 7  ;;  %965 = vmatprep.mubr.f32.mxu1 %v5184_v18  ;;  %643 = vmatprep.mubr.f32.mxu0 %v5184_v18  ;;  %v357_v38 = vunpack.c.l.s4 %v3565_v37  ;;  %vm546_vm2 = vcmask 130048   ;;  %vm550_vm3 = vcmask 392192  }
  0x17   : > { %v296_v5 = vunpack.c.0.s8 %v295_v3  ;;  %s3569_s21 = smov 96   ;;  %s3570_s22 = smov 32   ;;  %vm548_vm4 = vcmask 261120   ;;  %vm552_vm5 = vcmask 523264   ;;  %vm554_vm6 = vcmask 654336  }
  0x18   : > { %s3366_s30 = sshll.u32 %s3658_s29, 2  ;;  %v312_v7 = vsub.s32 0, %v3660_v4  ;;  %s3411_s8 = smul.u32 96, %s3658_s29  ;;  %v358_v51 = vunpack.c.0.s8 %v357_v38  ;;  %vm556_vm7 = vcmask 785408   ;;  %vm558_vm8 = vcmask 916480  }
  0x19   : > { %s255_s7 = scalar_lea.vmem %s5175_s0, %s3366_s30  ;;  %v299_v6 = vsub.s32 %v296_v5, %v3660_v4  ;;  %s3571_s24 = smov 16   ;;  %vm572_vm9 = vcmask 1043456   ;;  %vm568_vm10 = vcmask 31744  }
  0x1a   : > { %v3369_v8 = vld.sshfl [vmem:[%s255_s7] sm:$0x33 pattern:$0x75316420]  ;;  %s271_s11 = scalar_lea.vmem %s5178_s3, %s3411_s8  ;;  %s3572_s26 = smov 48  }
  0x1b   : > { %v300_v9 = vrot.slane %v3369_v8, %v299_v6  ;;  %v293_v10 = vcombine.high %v3369_v8, %v3369_v8  ;;  %v274_v19 = vld [vmem:[%s271_s11 + $0x8] sm:$0xff]  ;;  %v273_v22 = vld [vmem:[%s271_s11] sm:$0xff]  ;;  %v275_v27 = vld [vmem:[%s271_s11 + $0x10] sm:$0x3]  ;;  %v3732_v8 = vsub.s32 %v358_v51, %v3660_v4  ;;  %s3573_s30 = smov 80   ;;  %s3574_s5 = smov 112  }
  0x1c   : > { %v277_v24 = vld [vmem:[%s271_s11 + $0x20] sm:$0xff]  ;;  %v278_v25 = vld [vmem:[%s271_s11 + $0x28] sm:$0x3]  ;;  %v283_v30 = vld [vmem:[%s271_s11 + $0x50] sm:$0xff]  ;;  %s3575_s6 = smov [#allocation3]  }
  0x1d   : > { %v313_v11 = vrot.slane %v300_v9, %v312_v7  ;;  %v308_v12 = vcombine.high %v300_v9, %v300_v9  ;;  %v307_v13 = vrot.slane %v293_v10, %v299_v6  ;;  %v284_v31 = vld [vmem:[%s271_s11 + $0x58] sm:$0x3]  ;;  %v281_v33 = vld [vmem:[%s271_s11 + $0x40] sm:$0x3]  ;;  %v279_v39 = vld [vmem:[%s271_s11 + $0x30] sm:$0xff] }
  0x1e   : > { %v280_v32 = vld [vmem:[%s271_s11 + $0x38] sm:$0xff]  ;;  %v282_v41 = vld [vmem:[%s271_s11 + $0x48] sm:$0xff] }
  0x1f   : > { %327 = vperm.xlu0 %3481, %v313_v11   ;;  %v321_v14 = vrot.slane %v308_v12, %v312_v7  ;;  %v317_v15 = vrot.slane %v307_v13, %v312_v7  ;;  %v309_v16 = vcombine.high %v307_v13, %v307_v13  ;;  %v276_v34 = vld [vmem:[%s271_s11 + $0x18] sm:$0xff] }
  0x21   : > { %335 = vperm.xlu1 %3482, %v321_v14   ;;  %v325_v17 = vrot.slane %v309_v16, %v312_v7 }
  0x23   : > { %331 = vperm.xlu0 %3481, %v317_v15  }
  0x25   : > { %339 = vperm.xlu1 %3482, %v325_v17  }
  0x9a   : > { %v328_v20 = vpop.permute.xlu0 %327 }
  0x9b   : > { %v3674_v21 = vmul.f32 %v328_v20, %v274_v19  ;;  %v3678_v28 = vmul.f32 %v328_v20, %v273_v22  ;;  %v344_v40 = vmul.f32 %v328_v20, %v275_v27 }
  0x9c   : > { %v336_v23 = vpop.permute.xlu1 %335 }
  0x9d   : > { %662 = vrot.lane.b32.xlu0 %v3674_v21, %s3564_s12  ;;  %v3690_v44 = vmul.f32 %v336_v23, %v280_v32  ;;  %v3692_v45 = vmul.f32 %v336_v23, %v281_v33  ;;  %v3696_v47 = vmul.f32 %v336_v23, %v279_v39  ;;  %v1304_v53 = vrot.slane %v344_v40, 1 }
  0x9e   : > { %v332_v26 = vpop.permute.xlu0 %331  ;;  %v2263_v54 = vrot.slane %v344_v40, 2  ;;  %v1302_v57 = vrot.slane %v3674_v21, 1  ;;  %v1301_v58 = vrot.slane %v3678_v28, 1  ;;  %v2261_v61 = vrot.slane %v3674_v21, 2 }
  0x9f   : > { %v3680_v29 = vmul.f32 %v332_v26, %v277_v24  ;;  %v347_v35 = vmul.f32 %v332_v26, %v278_v25  ;;  %v3694_v46 = vmul.f32 %v332_v26, %v276_v34  ;;  %v1314_v56 = vrot.slane %v3692_v45, 1 }
  0xa0   : > { %v340_v36 = vpop.permute.xlu1 %339  ;;  %v1312_v59 = vrot.slane %v3690_v44, 1  ;;  %v1311_v62 = vrot.slane %v3696_v47, 1  ;;  %v2260_v0 = vrot.slane %v3678_v28, 2  ;;  %v2273_v9 = vrot.slane %v3692_v45, 2 }
  0xa1   : > { %660 = vrot.lane.b32.xlu0 %v3678_v28, %s3564_s12  ;;  %666 = vrot.lane.b32.xlu1 %v3680_v29, %s3564_s12  ;;  %v3686_v42 = vmul.f32 %v340_v36, %v283_v30  ;;  %v3688_v43 = vmul.f32 %v340_v36, %v284_v31  ;;  %v1309_v48 = vrot.slane %v347_v35, 1  ;;  %v1307_v50 = vrot.slane %v3680_v29, 1 }
  0xa2   : > { %v3700_v52 = vmul.f32 %v340_v36, %v282_v41  ;;  %v2268_v5 = vrot.slane %v347_v35, 2  ;;  %v1306_v6 = vrot.slane %v3694_v46, 1  ;;  %v2266_v7 = vrot.slane %v3680_v29, 2 }
  0xa3   : > { %v1319_v49 = vrot.slane %v3688_v43, 1  ;;  %v1317_v55 = vrot.slane %v3686_v42, 1  ;;  %v3712_v60 = vsel %vm1300_vm0, %v1307_v50, %v1309_v48  ;;  %v3736_v10 = vsel %vm1300_vm0, %v1302_v57, %v1304_v53 }
  0xa4   : > { %v1316_v3 = vrot.slane %v3700_v52, 1  ;;  %v3739_v11 = vsel %vm1300_vm0, %v1312_v59, %v1314_v56  ;;  %v3742_v12 = vsel %vm1300_vm0, %v1301_v58, %v1302_v57  ;;  %v3745_v13 = vsel %vm2259_vm1, %v2261_v61, %v2263_v54 }
  0xa5   : > { %980 = vrot.lane.b32.xlu0 %v3674_v21, %s3566_s13  ;;  %664 = vrot.lane.b32.xlu1 %v3694_v46, %s3564_s12  ;;  %v3717_v63 = vsel %vm1300_vm0, %v1317_v55, %v1319_v49  ;;  %v3748_v14 = vsel %vm1300_vm0, %v1311_v62, %v1312_v59  ;;  %v355_v15 = vcombine.high %v3678_v28, %v3696_v47  ;;  %v2278_v16 = vrot.slane %v3688_v43, 2 }
  0xa6   : > { %v1413_v1 = vcombine.low %v3712_v60, %v3717_v63  ;;  %v1414_v2 = vcombine.high %v3712_v60, %v3717_v63  ;;  %v3758_v17 = vsel %vm2259_vm1, %v2260_v0, %v2261_v61  ;;  %v2265_v19 = vrot.slane %v3694_v46, 2 }
  0xa7   : > { %v3762_v20 = vsel %vm1300_vm0, %v1316_v3, %v1317_v55  ;;  %v3765_v22 = vsel %vm1300_vm0, %v1306_v6, %v1307_v50  ;;  %v3768_v23 = vsel %vm2259_vm1, %v2266_v7, %v2268_v5  ;;  %v1397_v24 = vcombine.low %v3736_v10, %v3739_v11 }
  0xa8   : > { %v2271_v25 = vrot.slane %v3690_v44, 2  ;;  %v1329_v26 = vcombine.low %v3742_v12, %v3748_v14  ;;  %v2276_v27 = vrot.slane %v3686_v42, 2  ;;  %v371_v30 = vcombine.high %v3694_v46, %v3700_v52 }
  0xa9   : > { %978 = vrot.lane.b32.xlu0 %v3678_v28, %s3566_s13  ;;  %984 = vrot.lane.b32.xlu1 %v3680_v29, %s3566_s13  ;;  %v423_v31 = vcombine.high %v3674_v21, %v3690_v44  ;;  %v1345_v32 = vcombine.low %v3765_v22, %v3762_v20  ;;  %v439_v33 = vcombine.high %v3680_v29, %v3686_v42  ;;  %v2270_v36 = vrot.slane %v3696_v47, 2 }
  0xaa   : > { %v354_v34 = vcombine.low %v3678_v28, %v3696_v47  ;;  %v370_v35 = vcombine.low %v3694_v46, %v3700_v52  ;;  %v3794_v37 = vrot.slane %v355_v15, %v3732_v8  ;;  %v3797_v38 = vrot.slane %v371_v30, %v3732_v8 }
  0xab   : > { %v3800_v39 = vrot.slane %v423_v31, %v3732_v8  ;;  %v3803_v28 = vrot.slane %v439_v33, %v3732_v8  ;;  %v422_v43 = vcombine.low %v3674_v21, %v3690_v44  ;;  %v2275_v45 = vrot.slane %v3700_v52, 2 }
  0xac   : > { %v3806_v40 = vrot.slane %v354_v34, %v3732_v8  ;;  %v3809_v41 = vrot.slane %v370_v35, %v3732_v8  ;;  %v438_v48 = vcombine.low %v3680_v29, %v3686_v42  ;;  %v403_v49 = vcombine.high %v3794_v37, %v3797_v38 }
  0xad   : > { %670 = vrot.lane.b32.xlu0 %v3690_v44, %s3564_s12  ;;  %982 = vrot.lane.b32.xlu1 %v3694_v46, %s3566_s13  ;;  %v402_v46 = vcombine.low %v3794_v37, %v3797_v38  ;;  %v3821_v50 = vsel %vm2259_vm1, %v2276_v27, %v2278_v16  ;;  %v471_v51 = vcombine.high %v3800_v39, %v3803_v28 }
  0xae   : > { %v387_v21 = vcombine.high %v3806_v40, %v3809_v41  ;;  %v386_v53 = vcombine.low %v3806_v40, %v3809_v41  ;;  %v3834_v29 = vrot.slane %v422_v43, %v3732_v8  ;;  %v3837_v54 = vrot.slane %v438_v48, %v3732_v8 }
  0xaf   : > { %v470_v55 = vcombine.low %v3800_v39, %v3803_v28  ;;  %v1330_v56 = vcombine.high %v3742_v12, %v3748_v14  ;;  %v1346_v57 = vcombine.high %v3765_v22, %v3762_v20  ;;  %v3849_v58 = vsel %vm2259_vm1, %v2270_v36, %v2271_v25 }
  0xb0   : > { %v2372_v59 = vcombine.low %v3768_v23, %v3821_v50  ;;  %v3854_v61 = vsel %vm2259_vm1, %v2275_v45, %v2276_v27  ;;  %v455_v62 = vcombine.high %v3834_v29, %v3837_v54  ;;  %v454_v0 = vcombine.low %v3834_v29, %v3837_v54 }
  0xb1   : > { %668 = vrot.lane.b32.xlu0 %v3696_v47, %s3564_s12  ;;  %674 = vrot.lane.b32.xlu1 %v3686_v42, %s3564_s12  ;;  %v2267_v3 = vsel %vm2259_vm1, %v2265_v19, %v2266_v7  ;;  %v1398_v5 = vcombine.high %v3736_v10, %v3739_v11  ;;  %v3864_v6 = vrot.slane %v1329_v26, %v3732_v8 }
  0xb2   : > { %v2288_v16 = vcombine.low %v3758_v17, %v3849_v58  ;;  %v2304_v19 = vcombine.low %v2267_v3, %v3854_v61  ;;  %v3883_v26 = vrot.slane %v1330_v56, %v3732_v8  ;;  %v3891_v27 = vrot.slane %v2372_v59, %v3732_v8 }
  0xb3   : > { %v3894_v30 = vrot.slane %v1397_v24, %v3732_v8  ;;  %v3900_v31 = vrot.slane %v1413_v1, %v3732_v8  ;;  %v3908_v35 = vrot.slane %v1398_v5, %v3732_v8  ;;  %v3920_v24 = vrot.slane %v1414_v2, %v3732_v8 }
  0xb4   : > { %v2289_v45 = vcombine.high %v3758_v17, %v3849_v58 }
  0xb5   : > { %988 = vrot.lane.b32.xlu0 %v3690_v44, %s3566_s13  ;;  %672 = vrot.lane.b32.xlu1 %v3700_v52, %s3564_s12  ;;  %v3846_v44 = vsel %vm2259_vm1, %v2271_v25, %v2273_v9  ;;  %v3867_v9 = vrot.slane %v1345_v32, %v3732_v8  ;;  %v2305_v32 = vcombine.high %v2267_v3, %v3854_v61 }
  0xb6   : > { %v2356_v15 = vcombine.low %v3745_v13, %v3846_v44  ;;  %v2357_v7 = vcombine.high %v3745_v13, %v3846_v44  ;;  %v1430_v1 = vcombine.high %v3894_v30, %v3900_v31  ;;  %v1429_v36 = vcombine.low %v3894_v30, %v3900_v31 }
  0xb7   : > { %v1362_v25 = vcombine.high %v3864_v6, %v3867_v9  ;;  %v1445_v56 = vcombine.low %v3908_v35, %v3920_v24  ;;  %v3945_v5 = vrot.slane %v2305_v32, %v3732_v8  ;;  %v5198_v30 = vcombine.low %v3864_v6, %v3867_v9 }
  0xb8   : > { %v3925_v43 = vrot.slane %v2356_v15, %v3732_v8 }
  0xb9   : > { %986 = vrot.lane.b32.xlu0 %v3696_v47, %s3566_s13  ;;  %992 = vrot.lane.b32.xlu1 %v3686_v42, %s3566_s13  ;;  %v3886_v47 = vrot.slane %v1346_v57, %v3732_v8  ;;  %v2373_v42 = vcombine.high %v3768_v23, %v3821_v50  ;;  %v3939_v57 = vrot.slane %v2288_v16, %v3732_v8 }
  0xba   : > { %v3957_v16 = vrot.slane %v2289_v45, %v3732_v8  ;;  %v2389_v32 = vcombine.high %v3925_v43, %v3891_v27 }
  0xbb   : > { %v1377_v33 = vcombine.low %v3883_v26, %v3886_v47  ;;  %v1378_v34 = vcombine.high %v3883_v26, %v3886_v47  ;;  %v3942_v59 = vrot.slane %v2373_v42, %v3732_v8  ;;  %v5197_v47 = vcombine.high %v3908_v35, %v3920_v24 }
  0xbd   : > { %1625 = vrot.lane.b32.xlu0 %v3736_v10, %s3564_s12  ;;  %990 = vrot.lane.b32.xlu1 %v3700_v52, %s3566_s13  ;;  %v3930_v52 = vrot.slane %v2304_v19, %v3732_v8  ;;  %v3954_v19 = vrot.slane %v2357_v7, %v3732_v8 }
  0xbf   : > { %v2320_v42 = vcombine.low %v3939_v57, %v3930_v52  ;;  %v2321_v15 = vcombine.high %v3939_v57, %v3930_v52 }
  0xc1   : > { %1623 = vrot.lane.b32.xlu0 %v3742_v12, %s3564_s12  ;;  %1629 = vrot.lane.b32.xlu1 %v3712_v60, %s3564_s12 }
  0xc5   : > { %1943 = vrot.lane.b32.xlu0 %v3736_v10, %s3566_s13  ;;  %1627 = vrot.lane.b32.xlu1 %v3765_v22, %s3564_s12 }
  0xc9   : > { %1941 = vrot.lane.b32.xlu0 %v3742_v12, %s3566_s13  ;;  %1947 = vrot.lane.b32.xlu1 %v3712_v60, %s3566_s13  ;;  %v3567_v60 = vmov 1934713408  }
  0xca   : > { %v389_v10 = vunpack.c.l.s4 %v3567_v60 }
  0xcd   : > { %2584 = vrot.lane.b32.xlu0 %v3745_v13, %s3564_s12  ;;  %1945 = vrot.lane.b32.xlu1 %v3765_v22, %s3566_s13 }
  0xd1   : > { %2582 = vrot.lane.b32.xlu0 %v3758_v17, %s3564_s12  ;;  %2588 = vrot.lane.b32.xlu1 %v3768_v23, %s3564_s12 }
  0xd5   : > { %2902 = vrot.lane.b32.xlu0 %v3745_v13, %s3566_s13  ;;  %2586 = vrot.lane.b32.xlu1 %v2267_v3, %s3564_s12 }
  0xd9   : > { %2900 = vrot.lane.b32.xlu0 %v3758_v17, %s3566_s13  ;;  %2906 = vrot.lane.b32.xlu1 %v3768_v23, %s3566_s13 }
  0xdd   : > { %1633 = vrot.lane.b32.xlu0 %v3739_v11, %s3564_s12  ;;  %2904 = vrot.lane.b32.xlu1 %v2267_v3, %s3566_s13 }
  0xe1   : > { %1631 = vrot.lane.b32.xlu0 %v3748_v14, %s3564_s12  ;;  %1637 = vrot.lane.b32.xlu1 %v3717_v63, %s3564_s12 }
  0xe5   : > { %1951 = vrot.lane.b32.xlu0 %v3739_v11, %s3566_s13  ;;  %1635 = vrot.lane.b32.xlu1 %v3762_v20, %s3564_s12  ;;  %v390_v11 = vunpack.c.0.s8 %v389_v10 }
  0xe9   : > { %1949 = vrot.lane.b32.xlu0 %v3748_v14, %s3566_s13  ;;  %1955 = vrot.lane.b32.xlu1 %v3717_v63, %s3566_s13  ;;  %v4024_v63 = vsub.s32 %v390_v11, %v3660_v4 }
  0xeb   : > { %v410_v12 = vrot.slane %v402_v46, %v4024_v63  ;;  %v485_v4 = vrot.slane %v471_v51, %v4024_v63  ;;  %v401_v13 = vrot.slane %v387_v21, %v4024_v63  ;;  %v4049_v14 = vrot.slane %v386_v53, %v4024_v63 }
  0xec   : > { %v469_v17 = vrot.slane %v455_v62, %v4024_v63  ;;  %v4063_v22 = vrot.slane %v454_v0, %v4024_v63  ;;  %v478_v23 = vrot.slane %v470_v55, %v4024_v63  ;;  %v417_v41 = vrot.slane %v403_v49, %v4024_v63 }
  0xed   : > { %2592 = vrot.lane.b32.xlu0 %v3846_v44, %s3564_s12  ;;  %1953 = vrot.lane.b32.xlu1 %v3762_v20, %s3566_s13  ;;  %v418_v20 = vcombine.high %v4049_v14, %v5184_v18  ;;  %v420_v49 = vcombine.high %v410_v12, %v5184_v18  ;;  %v489_v51 = vcombine.high %v485_v4, %v5184_v18 }
  0xee   : > { %v486_v40 = vcombine.high %v4063_v22, %v5184_v18  ;;  %v487_v46 = vcombine.high %v469_v17, %v5184_v18  ;;  %v488_v28 = vcombine.high %v478_v23, %v5184_v18  ;;  %v1376_v29 = vrot.slane %v1362_v25, %v4024_v63 }
  0xef   : > { %v421_v54 = vcombine.high %v417_v41, %v5184_v18  ;;  %v1392_v3 = vrot.slane %v1378_v34, %v4024_v63  ;;  %v1453_v25 = vrot.slane %v1445_v56, %v4024_v63  ;;  %v1460_v34 = vrot.slane %v5197_v47, %v4024_v63 }
  0xf0   : > { %v4153_v31 = vrot.slane %v5198_v30, %v4024_v63  ;;  %v1394_v9 = vcombine.high %v1376_v29, %v5184_v18 }
  0xf1   : > { %2590 = vrot.lane.b32.xlu0 %v3849_v58, %s3564_s12  ;;  %2596 = vrot.lane.b32.xlu1 %v3821_v50, %s3564_s12  ;;  %v1463_v24 = vcombine.high %v1453_v25, %v5184_v18 }
  0xf2   : > { %5199 = vst [vmem:[#allocation7_spill] sm:$0xff] %v4153_v31  ;;  %v1393_v10 = vcombine.high %v4153_v31, %v5184_v18 }
  0xf5   : > { %2910 = vrot.lane.b32.xlu0 %v3846_v44, %s3566_s13  ;;  %2594 = vrot.lane.b32.xlu1 %v3854_v61, %s3564_s12  ;;  %s249_s12 = sand.u32 1, %s3543_s16  }
  0xf9   : > { %2908 = vrot.lane.b32.xlu0 %v3849_v58, %s3566_s13  ;;  %2914 = vrot.lane.b32.xlu1 %v3821_v50, %s3566_s13  ;;  %v419_v50 = vcombine.high %v401_v13, %v5184_v18  ;;  %v1385_v58 = vrot.slane %v1377_v33, %v4024_v63  ;;  %v4137_v33 = vrot.slane %v1429_v36, %v4024_v63 }
  0xfb   : > { %5196 = vst [vmem:[#allocation6_spill] sm:$0xff] %v4137_v33  ;;  %v1461_v26 = vcombine.high %v4137_v33, %v5184_v18 }
  0xfd   : > { %2912 = vrot.lane.b32.xlu1 %v3854_v61, %s3566_s13  ;;  %503 = vrot.lane.b32.xlu0 %v410_v12, %s3568_s14  ;;  %v1444_v61 = vrot.slane %v1430_v1, %v4024_v63  ;;  %s3365_s13 = sshll.u32 %s249_s12, 4 }
  0xff   : > { %v1462_v11 = vcombine.high %v1444_v61, %v5184_v18 }
 0x101   : > { %539 = vrot.lane.b32.xlu0 %v485_v4, %s3569_s21  ;;  %495 = vrot.lane.b32.xlu1 %v401_v13, %s3570_s22  ;;  %v1395_v13 = vcombine.high %v1385_v58, %v5184_v18 }
 0x105   : > { %523 = vrot.lane.b32.xlu1 %v469_v17, %s3570_s22  ;;  %491 = vrot.lane.b32.xlu0 %v418_v20, %s3571_s24  ;;  %v1464_v17 = vcombine.high %v1460_v34, %v5184_v18  ;;  %v5200_v20 = vcombine.low %v3925_v43, %v3891_v27 }
 0x109   : > { %531 = vrot.lane.b32.xlu1 %v478_v23, %s3568_s14  ;;  %519 = vrot.lane.b32.xlu0 %v486_v40, %s3571_s24  ;;  %v4182_v23 = vrot.slane %v5200_v20, %v4024_v63 }
 0x10d   : > { %511 = vrot.lane.b32.xlu1 %v417_v41, %s3569_s21  ;;  %527 = vrot.lane.b32.xlu0 %v487_v46, %s3572_s26 }
 0x10f   : > { %v4082_v39 = vpop.permute.xlu0 %662 }
 0x111   : > { %535 = vrot.lane.b32.xlu1 %v488_v28, %s3573_s30  ;;  %499 = vrot.lane.b32.xlu0 %v419_v50, %s3572_s26  ;;  %v2420_v50 = vcombine.high %v4182_v23, %v5184_v18 }
 0x113   : > { %v4088_v37 = vpop.permute.xlu0 %660  ;;  %v4090_v38 = vpop.permute.xlu1 %666 }
 0x115   : > { %507 = vrot.lane.b32.xlu1 %v420_v49, %s3573_s30  ;;  %543 = vrot.lane.b32.xlu0 %v489_v51, %s3574_s5  ;;  %v1396_v49 = vcombine.high %v1392_v3, %v5184_v18  ;;  %v4199_v51 = vrot.slane %v2320_v42, %v4024_v63  ;;  %v2403_v42 = vrot.slane %v2389_v32, %v4024_v63 }
 0x117   : > { %v4096_v21 = vpop.permute.xlu0 %980  ;;  %v4098_v53 = vpop.permute.xlu1 %664 }
 0x119   : > { %1470 = vrot.lane.b32.xlu1 %v1376_v29, %s3570_s22  ;;  %515 = vrot.lane.b32.xlu0 %v421_v54, %s3574_s5 }
 0x11b   : > { %v4107_v55 = vpop.permute.xlu0 %978  ;;  %v4109_v44 = vpop.permute.xlu1 %984 }
 0x11d   : > { %1478 = vrot.lane.b32.xlu1 %v1385_v58, %s3568_s14  ;;  %1498 = vrot.lane.b32.xlu0 %v1444_v61, %s3570_s22 }
 0x11f   : > { %v4121_v62 = vpop.permute.xlu0 %670  ;;  %v4123_v0 = vpop.permute.xlu1 %982 }
 0x120   : > { %v752_v29 = vcombine.low %v4082_v39, %v4121_v62 }
 0x121   : > { %1486 = vrot.lane.b32.xlu1 %v1392_v3, %s3569_s21  ;;  %1506 = vrot.lane.b32.xlu0 %v1453_v25, %s3568_s14 }
 0x123   : > { %v4141_v1 = vpop.permute.xlu0 %668  ;;  %v675_v60 = vpop.permute.xlu1 %674 }
 0x124   : > { %v768_v40 = vcombine.low %v4090_v38, %v675_v60  ;;  %v684_v54 = vcombine.low %v4088_v37, %v4141_v1  ;;  %v769_v58 = vcombine.high %v4090_v38, %v675_v60  ;;  %v2352_v38 = vcombine.high %v4199_v51, %v5184_v18 }
 0x125   : > { %1494 = vrot.lane.b32.xlu1 %v1461_v26, %s3571_s24  ;;  %1514 = vrot.lane.b32.xlu0 %v1460_v34, %s3569_s21  ;;  %v753_v60 = vcombine.high %v4082_v39, %v4121_v62  ;;  %v4228_v34 = vrot.slane %v752_v29, %v3732_v8  ;;  %v685_v27 = vcombine.high %v4088_v37, %v4141_v1 }
 0x126   : > { %v4209_v61 = vrot.slane %v768_v40, %v3732_v8  ;;  %v4233_v43 = vrot.slane %v684_v54, %v3732_v8  ;;  %v783_v32 = vrot.slane %v769_v58, %v3732_v8  ;;  %v4242_v39 = vrot.slane %v2321_v15, %v4024_v63 }
 0x127   : > { %v4157_v36 = vpop.permute.xlu0 %988  ;;  %v673_v56 = vpop.permute.xlu1 %672  ;;  %v767_v57 = vrot.slane %v753_v60, %v3732_v8  ;;  %v699_v15 = vrot.slane %v685_v27, %v3732_v8 }
 0x128   : > { %v700_v41 = vcombine.low %v4098_v53, %v673_v56  ;;  %v701_v3 = vcombine.high %v4098_v53, %v673_v56  ;;  %v2421_v53 = vcombine.high %v2403_v42, %v5184_v18  ;;  %v785_v37 = vcombine.high %v4228_v34, %v4209_v61 }
 0x129   : > { %1466 = vrot.lane.b32.xlu1 %v1393_v10, %s3571_s24  ;;  %1502 = vrot.lane.b32.xlu0 %v1462_v11, %s3572_s26  ;;  %v1070_v11 = vcombine.low %v4096_v21, %v4157_v36 }
 0x12a   : > { %v4217_v25 = vrot.slane %v700_v41, %v3732_v8  ;;  %v715_v62 = vrot.slane %v701_v3, %v3732_v8 }
 0x12b   : > { %v4164_v35 = vpop.permute.xlu0 %986  ;;  %v4166_v6 = vpop.permute.xlu1 %992  ;;  %v1078_v29 = vrot.slane %v1070_v11, %v3732_v8 }
 0x12c   : > { %v1086_v1 = vcombine.low %v4109_v44, %v4166_v6  ;;  %v717_v52 = vcombine.high %v4233_v43, %v4217_v25  ;;  %v1087_v58 = vcombine.high %v4109_v44, %v4166_v6  ;;  %v1071_v44 = vcombine.high %v4096_v21, %v4157_v36 }
 0x12d   : > { %1474 = vrot.lane.b32.xlu1 %v1394_v9, %s3572_s26  ;;  %1510 = vrot.lane.b32.xlu0 %v1463_v24, %s3573_s30  ;;  %v1002_v9 = vcombine.low %v4107_v55, %v4164_v35  ;;  %v4268_v24 = vrot.slane %v785_v37, %v4024_v63  ;;  %v1003_v6 = vcombine.high %v4107_v55, %v4164_v35 }
 0x12e   : > { %v733_v55 = vcombine.high %v699_v15, %v715_v62  ;;  %v1085_v35 = vrot.slane %v1071_v44, %v3732_v8 }
 0x12f   : > { %v4172_v12 = vpop.permute.xlu0 %1625  ;;  %v4174_v4 = vpop.permute.xlu1 %990  ;;  %v4285_v54 = vrot.slane %v1002_v9, %v3732_v8  ;;  %v1017_v11 = vrot.slane %v1003_v6, %v3732_v8 }
 0x130   : > { %v1018_v30 = vcombine.low %v4123_v0, %v4174_v4  ;;  %v1019_v3 = vcombine.high %v4123_v0, %v4174_v4  ;;  %v1101_v0 = vrot.slane %v1087_v58, %v3732_v8  ;;  %v801_v4 = vcombine.high %v767_v57, %v783_v32 }
 0x131   : > { %1482 = vrot.lane.b32.xlu1 %v1395_v13, %s3573_s30  ;;  %1518 = vrot.lane.b32.xlu0 %v1464_v17, %s3574_s5  ;;  %v800_v13 = vcombine.low %v767_v57, %v783_v32  ;;  %v4271_v17 = vrot.slane %v1086_v1, %v3732_v8 }
 0x132   : > { %v4274_v20 = vrot.slane %v1018_v30, %v3732_v8  ;;  %v1033_v1 = vrot.slane %v1019_v3, %v3732_v8  ;;  %v815_v9 = vrot.slane %v801_v4, %v4024_v63  ;;  %v1119_v44 = vcombine.high %v1085_v35, %v1101_v0 }
 0x133   : > { %v4188_v46 = vpop.permute.xlu0 %1623  ;;  %v4190_v28 = vpop.permute.xlu1 %1629  ;;  %v784_v4 = vcombine.low %v4228_v34, %v4209_v61 }
 0x134   : > { %v1035_v37 = vcombine.high %v4285_v54, %v4274_v20  ;;  %v1051_v6 = vcombine.high %v1017_v11, %v1033_v1 }
 0x135   : > { %2453 = vrot.lane.b32.xlu1 %v2420_v50, %s3571_s24  ;;  %1490 = vrot.lane.b32.xlu0 %v1396_v49, %s3574_s5  ;;  %v4281_v50 = vrot.slane %v717_v52, %v4024_v63  ;;  %v732_v49 = vcombine.low %v699_v15, %v715_v62  ;;  %v1050_v62 = vcombine.low %v1017_v11, %v1033_v1 }
 0x136   : > { %v4324_v36 = vrot.slane %v1035_v37, %v4024_v63  ;;  %v716_v15 = vcombine.low %v4233_v43, %v4217_v25  ;;  %v1102_v25 = vcombine.low %v1078_v29, %v4271_v17  ;;  %v4372_v61 = vrot.slane %v784_v4, %v4024_v63 }
 0x137   : > { %v4219_v26 = vpop.permute.xlu0 %1943  ;;  %v4221_v47 = vpop.permute.xlu1 %1627  ;;  %v4303_v27 = vrot.slane %v732_v49, %v4024_v63  ;;  %v1118_v49 = vcombine.low %v1085_v35, %v1101_v0  ;;  %v4350_v37 = vrot.slane %v1050_v62, %v4024_v63  ;;  %v4366_v0 = vrot.slane %v1051_v6, %v4024_v63 }
 0x138   : > { %v4369_v1 = vrot.slane %v716_v15, %v4024_v63  ;;  %5202 = vst [vmem:[#allocation9_spill] sm:$0xff] %v4372_v61  ;;  %v4383_v35 = vrot.slane %v1102_v25, %v4024_v63  ;;  %v816_v11 = vcombine.high %v4372_v61, %v5184_v18  ;;  %v1034_v6 = vcombine.low %v4285_v54, %v4274_v20 }
 0x139   : > { %2425 = vrot.lane.b32.xlu1 %v2352_v38, %s3571_s24  ;;  %2457 = vrot.lane.b32.xlu0 %v2403_v42, %s3570_s22  ;;  %v4294_v42 = vrot.slane %v800_v13, %v4024_v63  ;;  %v4337_v13 = vrot.slane %v733_v55, %v4024_v63  ;;  %v817_v4 = vcombine.high %v4268_v24, %v5184_v18 }
 0x13a   : > { %5201 = vst [vmem:[#allocation8_spill] sm:$0xff] %v4369_v1  ;;  %5203 = vst [vmem:[#allocation10_spill] sm:$0xff] %v4383_v35  ;;  %v749_v45 = vcombine.high %v4281_v50, %v5184_v18  ;;  %v4410_v7 = vrot.slane %v1034_v6, %v4024_v63 }
 0x13b   : > { %v4252_v56 = vpop.permute.xlu0 %1941  ;;  %v4254_v10 = vpop.permute.xlu1 %1947  ;;  %v818_v25 = vcombine.high %v4294_v42, %v5184_v18 }
 0x13c   : > { %5204 = vst [vmem:[#allocation11_spill] sm:$0xff] %v4410_v7 }
 0x13d   : > { %2429 = vrot.lane.b32.xlu1 %v4242_v39, %s3570_s22  ;;  %2461 = vrot.lane.b32.xlu0 %v2421_v53, %s3572_s26  ;;  %v1103_v53 = vcombine.high %v1078_v29, %v4271_v17  ;;  %v748_v29 = vcombine.high %v4369_v1, %v5184_v18 }
 0x13f   : > { %v4276_v40 = vpop.permute.xlu0 %2584  ;;  %v4278_v41 = vpop.permute.xlu1 %1945  ;;  %v1117_v21 = vrot.slane %v1103_v53, %v4024_v63  ;;  %v1126_v53 = vrot.slane %v1118_v49, %v4024_v63  ;;  %v4363_v49 = vrot.slane %v1119_v44, %v4024_v63  ;;  %v1134_v44 = vcombine.high %v4383_v35, %v5184_v18 }
 0x141   : > { %853 = vrot.lane.b32.xlu1 %v4268_v24, %s3570_s22  ;;  %825 = vrot.lane.b32.xlu0 %v4281_v50, %s3570_s22  ;;  %v1135_v24 = vcombine.high %v1117_v21, %v5184_v18  ;;  %v819_v50 = vcombine.high %v815_v9, %v5184_v18  ;;  %v1137_v48 = vcombine.high %v4363_v49, %v5184_v18 }
 0x143   : > { %v4298_v38 = vpop.permute.xlu0 %2582  ;;  %v4300_v60 = vpop.permute.xlu1 %2588 }
 0x145   : > { %833 = vrot.lane.b32.xlu1 %v4303_v27, %s3568_s14  ;;  %861 = vrot.lane.b32.xlu0 %v4294_v42, %s3568_s14  ;;  %v1066_v42 = vcombine.high %v4410_v7, %v5184_v18 }
 0x147   : > { %v4318_v30 = vpop.permute.xlu0 %2902  ;;  %v4320_v52 = vpop.permute.xlu1 %2586 }
 0x149   : > { %1171 = vrot.lane.b32.xlu0 %v1117_v21, %s3570_s22  ;;  %1143 = vrot.lane.b32.xlu1 %v4324_v36, %s3570_s22 }
 0x14b   : > { %v4331_v32 = vpop.permute.xlu0 %2900  ;;  %v4333_v57 = vpop.permute.xlu1 %2906 }
 0x14d   : > { %869 = vrot.lane.b32.xlu0 %v815_v9, %s3569_s21  ;;  %841 = vrot.lane.b32.xlu1 %v4337_v13, %s3569_s21 }
 0x14f   : > { %v4344_v58 = vpop.permute.xlu0 %1633  ;;  %v4346_v3 = vpop.permute.xlu1 %2904 }
 0x151   : > { %1179 = vrot.lane.b32.xlu0 %v1126_v53, %s3568_s14  ;;  %1151 = vrot.lane.b32.xlu1 %v4350_v37, %s3568_s14 }
 0x153   : > { %v4358_v43 = vpop.permute.xlu0 %1631  ;;  %v4360_v55 = vpop.permute.xlu1 %1637 }
 0x155   : > { %1187 = vrot.lane.b32.xlu0 %v4363_v49, %s3569_s21  ;;  %1159 = vrot.lane.b32.xlu1 %v4366_v0, %s3569_s21 }
 0x157   : > { %v4378_v34 = vpop.permute.xlu0 %1951  ;;  %v1636_v17 = vpop.permute.xlu1 %1635 }
 0x158   : > { %v1663_v21 = vcombine.low %v4221_v47, %v1636_v17  ;;  %v2033_v33 = vcombine.low %v4219_v26, %v4378_v34 }
 0x159   : > { %821 = vrot.lane.b32.xlu0 %v748_v29, %s3571_s24  ;;  %849 = vrot.lane.b32.xlu1 %v816_v11, %s3571_s24 }
 0x15a   : > { %v4444_v2 = vrot.slane %v1663_v21, %v3732_v8  ;;  %v1068_v21 = vcombine.high %v4350_v37, %v5184_v18  ;;  %v1732_v37 = vcombine.high %v4190_v28, %v4360_v55 }
 0x15b   : > { %v4389_v62 = vpop.permute.xlu0 %1949  ;;  %v4391_v15 = vpop.permute.xlu1 %1955 }
 0x15c   : > { %v4501_v49 = vrot.slane %v1732_v37, %v3732_v8 }
 0x15d   : > { %1167 = vrot.lane.b32.xlu0 %v1134_v44, %s3571_s24  ;;  %857 = vrot.lane.b32.xlu1 %v817_v4, %s3572_s26  ;;  %v1647_v4 = vcombine.low %v4188_v46, %v4358_v43 }
 0x15f   : > { %v4403_v29 = vpop.permute.xlu0 %2592  ;;  %v4405_v11 = vpop.permute.xlu1 %1953 }
 0x161   : > { %865 = vrot.lane.b32.xlu0 %v818_v25, %s3573_s30  ;;  %829 = vrot.lane.b32.xlu1 %v749_v45, %s3572_s26  ;;  %v750_v45 = vcombine.high %v4303_v27, %v5184_v18  ;;  %v1136_v25 = vcombine.high %v1126_v53, %v5184_v18  ;;  %v1664_v27 = vcombine.high %v4221_v47, %v1636_v17 }
 0x162   : > { %v751_v53 = vcombine.high %v4337_v13, %v5184_v18  ;;  %v1715_v13 = vcombine.low %v4172_v12, %v4344_v58 }
 0x163   : > { %v4415_v20 = vpop.permute.xlu0 %2590  ;;  %v4417_v54 = vpop.permute.xlu1 %2596 }
 0x165   : > { %1175 = vrot.lane.b32.xlu0 %v1135_v24, %s3572_s26  ;;  %1139 = vrot.lane.b32.xlu1 %v1066_v42, %s3571_s24  ;;  %v1067_v42 = vcombine.high %v4324_v36, %v5184_v18  ;;  %v1731_v36 = vcombine.low %v4190_v28, %v4360_v55  ;;  %v1723_v28 = vrot.slane %v1715_v13, %v3732_v8 }
 0x167   : > { %v4424_v44 = vpop.permute.xlu0 %2910  ;;  %v4426_v6 = vpop.permute.xlu1 %2594 }
 0x169   : > { %873 = vrot.lane.b32.xlu0 %v819_v50, %s3574_s5  ;;  %837 = vrot.lane.b32.xlu1 %v750_v45, %s3573_s30  ;;  %v1648_v50 = vcombine.high %v4188_v46, %v4358_v43  ;;  %v4450_v45 = vrot.slane %v1647_v4, %v3732_v8  ;;  %v4464_v46 = vrot.slane %v1664_v27, %v3732_v8 }
 0x16a   : > { %v1981_v4 = vcombine.low %v4278_v41, %v4405_v11  ;;  %v1739_v27 = vrot.slane %v1731_v36, %v3732_v8 }
 0x16b   : > { %v4436_v24 = vpop.permute.xlu0 %2908  ;;  %v4438_v9 = vpop.permute.xlu1 %2914  ;;  %v1680_v43 = vcombine.high %v4450_v45, %v4444_v2 }
 0x16c   : > { %v1748_v36 = vcombine.high %v1723_v28, %v1739_v27  ;;  %v1747_v61 = vcombine.low %v1723_v28, %v1739_v27 }
 0x16d   : > { %1183 = vrot.lane.b32.xlu0 %v1136_v25, %s3573_s30  ;;  %1147 = vrot.lane.b32.xlu1 %v1067_v42, %s3572_s26  ;;  %v1662_v25 = vrot.slane %v1648_v50, %v3732_v8  ;;  %v1965_v42 = vcombine.low %v4252_v56, %v4389_v62  ;;  %v4486_v50 = vrot.slane %v1981_v4, %v3732_v8 }
 0x16e   : > { %v4489_v31 = vrot.slane %v1680_v43, %v4024_v63  ;;  %v1069_v43 = vcombine.high %v4366_v0, %v5184_v18  ;;  %v1966_v0 = vcombine.high %v4252_v56, %v4389_v62 }
 0x16f   : > { %v4457_v47 = vpop.permute.xlu0 %503  ;;  %v4459_v17 = vpop.permute.xlu1 %2912  ;;  %v4496_v55 = vrot.slane %v1965_v42, %v3732_v8  ;;  %v1696_v1 = vcombine.high %v1662_v25, %v4464_v46 }
 0x171   : > { %845 = vrot.lane.b32.xlu0 %v751_v53, %s3574_s5  ;;  %1155 = vrot.lane.b32.xlu1 %v1068_v21, %s3573_s30  ;;  %v1695_v53 = vcombine.low %v1662_v25, %v4464_v46  ;;  %v1716_v21 = vcombine.high %v4172_v12, %v4344_v58  ;;  %v2049_v12 = vcombine.low %v4254_v10, %v4391_v15 }
 0x172   : > { %v1998_v13 = vcombine.high %v4496_v55, %v4486_v50 }
 0x173   : > { %v4482_v7 = vpop.permute.xlu0 %539  ;;  %v496_v35 = vpop.permute.xlu1 %495  ;;  %v4512_v42 = vrot.slane %v1695_v53, %v4024_v63  ;;  %v1730_v37 = vrot.slane %v1716_v21, %v3732_v8  ;;  %v4527_v21 = vrot.slane %v1748_v36, %v4024_v63  ;;  %v4542_v36 = vrot.slane %v1966_v0, %v3732_v8 }
 0x174   : > { %v4536_v62 = vrot.slane %v1998_v13, %v4024_v63 }
 0x175   : > { %1191 = vrot.lane.b32.xlu0 %v1137_v48, %s3574_s5  ;;  %1788 = vrot.lane.b32.xlu1 %v4489_v31, %s3570_s22  ;;  %v1982_v48 = vcombine.high %v4278_v41, %v4405_v11  ;;  %v1763_v41 = vcombine.low %v1730_v37, %v4501_v49  ;;  %v4524_v11 = vrot.slane %v2049_v12, %v3732_v8 }
 0x176   : > { %v2041_v12 = vrot.slane %v2033_v33, %v3732_v8 }
 0x177   : > { %v492_v58 = vpop.permute.xlu0 %491  ;;  %v524_v4 = vpop.permute.xlu1 %523  ;;  %v4551_v13 = vrot.slane %v1763_v41, %v4024_v63 }
 0x178   : > { %v2066_v46 = vcombine.high %v2041_v12, %v4524_v11  ;;  %v547_v28 = vsel %vm546_vm2, %v4049_v14, %v492_v58 }
 0x179   : > { %1163 = vrot.lane.b32.xlu0 %v1069_v43, %s3574_s5  ;;  %1796 = vrot.lane.b32.xlu1 %v4512_v42, %s3568_s14  ;;  %v4531_v43 = vrot.slane %v1982_v48, %v3732_v8  ;;  %v549_v58 = vsel %vm548_vm4, %v547_v28, %v496_v35  ;;  %v2065_v28 = vcombine.low %v2041_v12, %v4524_v11  ;;  %v567_v12 = vld [vmem:[%s5177_s2] sm:$0xff] }
 0x17a   : > { %v2080_v41 = vrot.slane %v2066_v46, %v4024_v63 }
 0x17b   : > { %v520_v53 = vpop.permute.xlu0 %519  ;;  %v532_v18 = vpop.permute.xlu1 %531  ;;  %v2013_v27 = vcombine.low %v4542_v36, %v4531_v43 }
 0x17c   : > { %v560_v56 = vsel %vm546_vm2, %v4063_v22, %v520_v53  ;;  %v2050_v22 = vcombine.high %v4254_v10, %v4391_v15  ;;  %v4559_v53 = vrot.slane %v1696_v1, %v4024_v63  ;;  %v2034_v10 = vcombine.high %v4219_v26, %v4378_v34 }
 0x17d   : > { %1816 = vrot.lane.b32.xlu0 %v4527_v21, %s3570_s22  ;;  %2106 = vrot.lane.b32.xlu1 %v4536_v62, %s3570_s22  ;;  %v561_v33 = vsel %vm548_vm4, %v560_v56, %v524_v4  ;;  %v1764_v15 = vcombine.high %v1730_v37, %v4501_v49  ;;  %v4569_v4 = vrot.slane %v1747_v61, %v4024_v63 }
 0x17e   : > { %v4572_v14 = vrot.slane %v2050_v22, %v3732_v8  ;;  %v1679_v49 = vcombine.low %v4450_v45, %v4444_v2  ;;  %v4582_v56 = vrot.slane %v2013_v27, %v4024_v63  ;;  %v4585_v22 = vrot.slane %v2034_v10, %v3732_v8 }
 0x17f   : > { %v528_v25 = vpop.permute.xlu0 %527  ;;  %v512_v48 = vpop.permute.xlu1 %511 }
 0x180   : > { %v562_v0 = vsel %vm550_vm3, %v561_v33, %v528_v25  ;;  %v2081_v2 = vcombine.low %v4585_v22, %v4572_v14  ;;  %v5205_v25 = vmov 0.0  }
 0x181   : > { %1824 = vrot.lane.b32.xlu0 %v4551_v13, %s3568_s14  ;;  %1804 = vrot.lane.b32.xlu1 %v4559_v53, %s3569_s21  ;;  %v563_v26 = vsel %vm552_vm5, %v562_v0, %v532_v18  ;;  %v1778_v18 = vrot.slane %v1764_v15, %v4024_v63  ;;  %v1779_v33 = vcombine.high %v4569_v4, %v5205_v25 }
 0x182   : > { %v4603_v15 = vrot.slane %v1679_v49, %v4024_v63 }
 0x183   : > { %v500_v1 = vpop.permute.xlu0 %499  ;;  %v536_v34 = vpop.permute.xlu1 %535 }
 0x184   : > { %v551_v37 = vsel %vm550_vm3, %v549_v58, %v500_v1  ;;  %v564_v61 = vsel %vm554_vm6, %v563_v26, %v536_v34  ;;  %v1711_v58 = vcombine.high %v4603_v15, %v5205_v25  ;;  %v4619_v34 = vrot.slane %v2065_v28, %v4024_v63 }
 0x185   : > { %2134 = vrot.lane.b32.xlu0 %v2080_v41, %s3570_s22  ;;  %2114 = vrot.lane.b32.xlu1 %v4582_v56, %s3568_s14  ;;  %v553_v45 = vsel %vm552_vm5, %v551_v37, %v4457_v47  ;;  %v565_v27 = vsel %vm556_vm7, %v564_v61, %v4482_v7  ;;  %v2089_v7 = vrot.slane %v2081_v2, %v4024_v63 }
 0x186   : > { %5206 = vst [vmem:[#allocation12_spill] sm:$0xff] %v4619_v34  ;;  %v1780_v37 = vcombine.high %v4527_v21, %v5205_v25  ;;  %v1997_v61 = vcombine.low %v4496_v55, %v4486_v50  ;;  %v2097_v2 = vcombine.high %v4619_v34, %v5205_v25  ;;  %v2690_v21 = vcombine.low %v4300_v60, %v4417_v54 }
 0x187   : > { %v544_v35 = vpop.permute.xlu0 %543  ;;  %v508_v46 = vpop.permute.xlu1 %507  ;;  %v1712_v50 = vcombine.high %v4489_v31, %v5205_v25 }
 0x188   : > { %v555_v0 = vsel %vm554_vm6, %v553_v45, %v508_v46  ;;  %v566_v10 = vsel %vm558_vm8, %v565_v27, %v544_v35  ;;  %v1781_v46 = vcombine.high %v4551_v13, %v5205_v25  ;;  %v4649_v55 = vrot.slane %v1997_v61, %v4024_v63 }
 0x189   : > { %1832 = vrot.lane.b32.xlu0 %v1778_v18, %s3569_s21  ;;  %3370 = vmatprep.subr.msk.mxu0 %vm572_vm9, %v566_v10  ;;  %v557_v11 = vsel %vm556_vm7, %v555_v0, %v512_v48  ;;  %v2098_v13 = vcombine.high %v2080_v41, %v5205_v25  ;;  %v2698_v0 = vrot.slane %v2690_v21, %v3732_v8 }
 0x18a   : > { %1812 = vrot.lane.b32.xlu1 %v1779_v33, %s3571_s24  ;;  %5207 = vst [vmem:[#allocation13_spill] sm:$0xff] %v4649_v55  ;;  %v2674_v33 = vcombine.low %v4276_v40, %v4403_v29  ;;  %v2029_v31 = vcombine.high %v4649_v55, %v5205_v25  ;;  %v1713_v41 = vcombine.high %v4512_v42, %v5205_v25 }
 0x18b   : > { %v516_v47 = vpop.permute.xlu0 %515  ;;  %v4608_v1 = vpop.permute.xlu1 %1470  ;;  %v2099_v61 = vcombine.high %v2089_v7, %v5205_v25  ;;  %v2606_v42 = vcombine.low %v4298_v38, %v4415_v20  ;;  %v2082_v21 = vcombine.high %v4585_v22, %v4572_v14  ;;  %v2623_v55 = vcombine.high %v4320_v52, %v4426_v6 }
 0x18c   : > { %v559_v26 = vsel %vm558_vm8, %v557_v11, %v516_v47  ;;  %v2682_v10 = vrot.slane %v2674_v33, %v3732_v8 }
 0x18d   : > { %2142 = vrot.lane.b32.xlu0 %v2089_v7, %s3568_s14  ;;  %3371 = vmatpush1.msk.msra.mxu0 %vm572_vm9, %v559_v26  ;;  %v2096_v22 = vrot.slane %v2082_v21, %v4024_v63 }
 0x18e   : > { %1784 = vrot.lane.b32.xlu1 %v1711_v58, %s3571_s24  ;;  %3372 = vmatmul.mubr.msk.f32.vlgmr.msra.gmra.mxu0 %vm568_vm10, %v567_v12  ;;  %v1782_v12 = vcombine.high %v1778_v18, %v5205_v25  ;;  %v2706_v58 = vcombine.low %v2682_v10, %v2698_v0  ;;  %v2030_v18 = vcombine.high %v4536_v62, %v5205_v25 }
 0x18f   : > { %v4625_v48 = vpop.permute.xlu0 %1498  ;;  %v4627_v49 = vpop.permute.xlu1 %1478  ;;  %1283 = vmatprep.mubr.f32.mxu0 %v5205_v25  ;;  %v1714_v62 = vcombine.high %v4559_v53, %v5205_v25  ;;  %v2031_v53 = vcombine.high %v4582_v56, %v5205_v25 }
 0x191   : > { %1820 = vrot.lane.b32.xlu0 %v1780_v37, %s3572_s26 }
 0x192   : > { %2130 = vrot.lane.b32.xlu1 %v2097_v2, %s3571_s24  ;;  %v2622_v2 = vcombine.low %v4320_v52, %v4426_v6 }
 0x193   : > { %v4638_v35 = vpop.permute.xlu0 %1506  ;;  %v4640_v45 = vpop.permute.xlu1 %1486 }
 0x194   : > { %v2630_v33 = vrot.slane %v2622_v2, %v3732_v8 }
 0x195   : > { %1828 = vrot.lane.b32.xlu0 %v1781_v46, %s3573_s30  ;;  %v4685_v46 = vrot.slane %v2706_v58, %v4024_v63 }
 0x196   : > { %1792 = vrot.lane.b32.xlu1 %v1712_v50, %s3572_s26 }
 0x197   : > { %v4655_v27 = vpop.permute.xlu0 %1514  ;;  %v4657_v28 = vpop.permute.xlu1 %1494  ;;  %5208 = vst [vmem:[#allocation14_spill] sm:$0xff] %v4685_v46 }
 0x199   : > { %2138 = vrot.lane.b32.xlu0 %v2098_v13, %s3572_s26  ;;  %v2738_v13 = vcombine.high %v4685_v46, %v5205_v25 }
 0x19a   : > { %2102 = vrot.lane.b32.xlu1 %v2029_v31, %s3571_s24  ;;  %v2614_v31 = vrot.slane %v2606_v42, %v3732_v8 }
 0x19b   : > { %v4666_v47 = vpop.permute.xlu0 %1502  ;;  %v4668_v11 = vpop.permute.xlu1 %1466 }
 0x19c   : > { %v2638_v58 = vcombine.low %v2614_v31, %v2630_v33 }
 0x19d   : > { %1836 = vrot.lane.b32.xlu0 %v1782_v12, %s3574_s5 }
 0x19e   : > { %1800 = vrot.lane.b32.xlu1 %v1713_v41, %s3573_s30  ;;  %v2707_v41 = vcombine.high %v2682_v10, %v2698_v0  ;;  %v4719_v21 = vrot.slane %v2638_v58, %v4024_v63  ;;  %v2014_v0 = vcombine.high %v4542_v36, %v4531_v43 }
 0x19f   : > { %v4675_v26 = vpop.permute.xlu0 %1510  ;;  %v4677_v37 = vpop.permute.xlu1 %1474 }
 0x1a0   : > { %5210 = vst [vmem:[#allocation15_spill] sm:$0xff] %v4719_v21  ;;  %v2721_v58 = vrot.slane %v2707_v41, %v4024_v63  ;;  %v2670_v43 = vcombine.high %v4719_v21, %v5205_v25  ;;  %v2100_v41 = vcombine.high %v2096_v22, %v5205_v25 }
 0x1a1   : > { %2146 = vrot.lane.b32.xlu0 %v2099_v61, %s3573_s30 }
 0x1a2   : > { %2110 = vrot.lane.b32.xlu1 %v2030_v18, %s3572_s26  ;;  %v5209_v18 = vcombine.low %v3954_v19, %v3942_v59 }
 0x1a3   : > { %v4693_v7 = vpop.permute.xlu0 %1518  ;;  %v4695_v50 = vpop.permute.xlu1 %1482 }
 0x1a4   : > { %v2412_v42 = vrot.slane %v5209_v18, %v4024_v63  ;;  %v3008_v18 = vcombine.low %v4333_v57, %v4438_v9 }
 0x1a5   : > { %1808 = vrot.lane.b32.xlu0 %v1714_v62, %s3574_s5  ;;  %v2353_v62 = vcombine.high %v4242_v39, %v5205_v25 }
 0x1a6   : > { %2771 = vrot.lane.b32.xlu1 %v2738_v13, %s3571_s24 }
 0x1a7   : > { %v4705_v12 = vpop.permute.xlu0 %1490  ;;  %v2454_v14 = vpop.permute.xlu1 %2453 }
 0x1a8   : > { %v2487_v56 = vsel %vm546_vm2, %v4182_v23, %v2454_v14 }
 0x1a9   : > { %2150 = vrot.lane.b32.xlu0 %v2096_v22, %s3569_s21  ;;  %v5213_v22 = vcombine.low %v3957_v16, %v3945_v5 }
 0x1aa   : > { %2118 = vrot.lane.b32.xlu1 %v2031_v53, %s3573_s30 }
 0x1ab   : > { %v2458_v61 = vpop.permute.xlu0 %2457  ;;  %v2426_v2 = vpop.permute.xlu1 %2425 }
 0x1ac   : > { %v2488_v10 = vsel %vm548_vm4, %v2487_v56, %v2458_v61  ;;  %v2480_v13 = vsel %vm546_vm2, %v4199_v51, %v2426_v2  ;;  %v2992_v51 = vcombine.low %v4318_v30, %v4424_v44  ;;  %v3016_v61 = vrot.slane %v3008_v18, %v3732_v8 }
 0x1ad   : > { %2465 = vrot.lane.b32.xlu0 %v2412_v42, %s3568_s14  ;;  %v2028_v2 = vrot.slane %v2014_v0, %v4024_v63  ;;  %v2344_v18 = vrot.slane %v5213_v22, %v4024_v63  ;;  %v2691_v0 = vcombine.high %v4300_v60, %v4417_v54  ;;  %v2924_v60 = vcombine.low %v4331_v32, %v4436_v24 }
 0x1ae   : > { %2433 = vrot.lane.b32.xlu1 %v2353_v62, %s3572_s26  ;;  %v3000_v62 = vrot.slane %v2992_v51, %v3732_v8 }
 0x1af   : > { %v2462_v53 = vpop.permute.xlu0 %2461  ;;  %v2430_v39 = vpop.permute.xlu1 %2429  ;;  %v4786_v54 = vrot.slane %v2691_v0, %v3732_v8 }
 0x1b0   : > { %v4734_v46 = vsel %vm550_vm3, %v2488_v10, %v2462_v53  ;;  %v4737_v23 = vsel %vm548_vm4, %v2480_v13, %v2430_v39  ;;  %v2422_v13 = vcombine.high %v2412_v42, %v5205_v25  ;;  %v2639_v53 = vcombine.high %v2614_v31, %v2630_v33 }
 0x1b1   : > { %5211 = vst [vmem:[#allocation16_spill] sm:$0xff] %v4734_v46  ;;  %5212 = vst [vmem:[#allocation17_spill] sm:$0xff] %v4737_v23  ;;  %2775 = vrot.lane.b32.xlu0 %v2721_v58, %s3570_s22  ;;  %v3024_v39 = vcombine.low %v3000_v62, %v3016_v61  ;;  %v2739_v42 = vcombine.high %v2721_v58, %v5205_v25  ;;  %v2940_v33 = vcombine.low %v4346_v3, %v4459_v17 }
 0x1b2   : > { %2743 = vrot.lane.b32.xlu1 %v2670_v43, %s3571_s24  ;;  %v2653_v31 = vrot.slane %v2639_v53, %v4024_v63  ;;  %v2032_v53 = vcombine.high %v2028_v2, %v5205_v25  ;;  %v2354_v23 = vcombine.high %v2344_v18, %v5205_v25 }
 0x1b3   : > { %v4745_v36 = vpop.permute.xlu0 %825  ;;  %v4747_v14 = vpop.permute.xlu1 %853 }
 0x1b5   : > { %2154 = vrot.lane.b32.xlu0 %v2100_v41, %s3574_s5  ;;  %v4777_v41 = vrot.slane %v3024_v39, %v4024_v63  ;;  %v2948_v39 = vrot.slane %v2940_v33, %v3732_v8  ;;  %v5215_v33 = vcombine.high %v3954_v19, %v3942_v59  ;;  %v2671_v59 = vcombine.high %v2653_v31, %v5205_v25 }
 0x1b6   : > { %2122 = vrot.lane.b32.xlu1 %v2028_v2, %s3569_s21 }
 0x1b7   : > { %v4755_v56 = vpop.permute.xlu0 %861  ;;  %v4757_v10 = vpop.permute.xlu1 %833  ;;  %5214 = vst [vmem:[#allocation18_spill] sm:$0xff] %v4777_v41 }
 0x1b9   : > { %2469 = vrot.lane.b32.xlu0 %v2422_v13, %s3573_s30  ;;  %v2675_v13 = vcombine.high %v4276_v40, %v4403_v29  ;;  %v3056_v40 = vcombine.high %v4777_v41, %v5205_v25  ;;  %v2419_v41 = vrot.slane %v5215_v33, %v4024_v63  ;;  %v5217_v33 = vld [vmem:[#allocation9_spill] sm:$0xff] }
 0x1ba   : > { %2437 = vrot.lane.b32.xlu1 %v2344_v18, %s3568_s14  ;;  %v4832_v18 = vrot.slane %v2623_v55, %v3732_v8 }
 0x1bb   : > { %v4768_v43 = vpop.permute.xlu0 %1171  ;;  %v4770_v51 = vpop.permute.xlu1 %1143  ;;  %v4797_v29 = vrot.slane %v2675_v13, %v3732_v8 }
 0x1bd   : > { %2779 = vrot.lane.b32.xlu0 %v2739_v42, %s3572_s26  ;;  %v2932_v42 = vrot.slane %v2924_v60, %v3732_v8  ;;  %v2722_v0 = vcombine.low %v4797_v29, %v4786_v54  ;;  %v3025_v60 = vcombine.high %v3000_v62, %v3016_v61 }
 0x1be   : > { %2747 = vrot.lane.b32.xlu1 %v2653_v31, %s3570_s22 }
 0x1bf   : > { %v4788_v58 = vpop.permute.xlu0 %869  ;;  %v4790_v22 = vpop.permute.xlu1 %841  ;;  %v2956_v13 = vcombine.low %v2932_v42, %v2948_v39  ;;  %v2730_v46 = vrot.slane %v2722_v0, %v4024_v63  ;;  %v3039_v62 = vrot.slane %v3025_v60, %v4024_v63  ;;  %v5218_v60 = vcombine.high %v3957_v16, %v3945_v5 }
 0x1c0   : > { %v2993_v5 = vcombine.high %v4318_v30, %v4424_v44  ;;  %v3009_v16 = vcombine.high %v4333_v57, %v4438_v9  ;;  %v2925_v30 = vcombine.high %v4331_v32, %v4436_v24  ;;  %v5220_v57 = vld [vmem:[#allocation6_spill] sm:$0xff]  ;;  %v2941_v32 = vcombine.high %v4346_v3, %v4459_v17  ;;  %v5221_v24 = vld [vmem:[#allocation7_spill] sm:$0xff] }
 0x1c1   : > { %2126 = vrot.lane.b32.xlu0 %v2032_v53, %s3574_s5  ;;  %v4824_v19 = vrot.slane %v2956_v13, %v4024_v63  ;;  %v1528_v44 = vsel %vm546_vm2, %v5220_v57, %v4657_v28  ;;  %v1521_v28 = vsel %vm546_vm2, %v5221_v24, %v4668_v11 }
 0x1c2   : > { %3089 = vrot.lane.b32.xlu1 %v3056_v40, %s3571_s24 }
 0x1c3   : > { %v4804_v21 = vpop.permute.xlu0 %1179  ;;  %v4806_v2 = vpop.permute.xlu1 %1151  ;;  %5216 = vst [vmem:[#allocation19_spill] sm:$0xff] %v4824_v19  ;;  %v2988_v52 = vcombine.high %v4824_v19, %v5205_v25  ;;  %v2957_v19 = vcombine.high %v2932_v42, %v2948_v39  ;;  %v3057_v39 = vcombine.high %v3039_v62, %v5205_v25  ;;  %v5219_v42 = vld [vmem:[#allocation8_spill] sm:$0xff] }
 0x1c5   : > { %2473 = vrot.lane.b32.xlu0 %v2419_v41, %s3569_s21 }
 0x1c6   : > { %2441 = vrot.lane.b32.xlu1 %v2354_v23, %s3573_s30  ;;  %v2607_v23 = vcombine.high %v4298_v38, %v4415_v20  ;;  %v2423_v20 = vcombine.high %v2419_v41, %v5205_v25 }
 0x1c7   : > { %v4815_v53 = vpop.permute.xlu0 %1187  ;;  %v4817_v40 = vpop.permute.xlu1 %1159 }
 0x1c8   : > { %v4838_v6 = vrot.slane %v2607_v23, %v3732_v8 }
 0x1c9   : > { %2783 = vrot.lane.b32.xlu0 %v2730_v46, %s3568_s14 }
 0x1ca   : > { %2751 = vrot.lane.b32.xlu1 %v2671_v59, %s3572_s26  ;;  %v2654_v31 = vcombine.low %v4838_v6, %v4832_v18  ;;  %v2351_v59 = vrot.slane %v5218_v60, %v4024_v63  ;;  %v1529_v60 = vsel %vm548_vm4, %v1528_v44, %v4625_v48 }
 0x1cb   : > { %v822_v61 = vpop.permute.xlu0 %821  ;;  %v850_v0 = vpop.permute.xlu1 %849 }
 0x1cc   : > { %v883_v55 = vsel %vm546_vm2, %v5217_v33, %v850_v0  ;;  %v2662_v33 = vrot.slane %v2654_v31, %v4024_v63  ;;  %v2355_v9 = vcombine.high %v2351_v59, %v5205_v25 }
 0x1cd   : > { %3093 = vrot.lane.b32.xlu0 %v3039_v62, %s3570_s22  ;;  %v884_v23 = vsel %vm548_vm4, %v883_v55, %v4747_v14 }
 0x1ce   : > { %3061 = vrot.lane.b32.xlu1 %v2988_v52, %s3571_s24  ;;  %v2740_v52 = vcombine.high %v2730_v46, %v5205_v25 }
 0x1cf   : > { %v1168_v38 = vpop.permute.xlu0 %1167  ;;  %v858_v13 = vpop.permute.xlu1 %857 }
 0x1d0   : > { %v885_v34 = vsel %vm550_vm3, %v884_v23, %v858_v13  ;;  %v2971_v13 = vrot.slane %v2957_v19, %v4024_v63 }
 0x1d1   : > { %2477 = vrot.lane.b32.xlu0 %v2423_v20, %s3574_s5  ;;  %v886_v14 = vsel %vm552_vm5, %v885_v34, %v4755_v56  ;;  %v876_v20 = vsel %vm546_vm2, %v5219_v42, %v822_v61  ;;  %v2723_v34 = vcombine.high %v4797_v29, %v4786_v54  ;;  %v4880_v56 = vrot.slane %v2993_v5, %v3732_v8 }
 0x1d2   : > { %2445 = vrot.lane.b32.xlu1 %v2351_v59, %s3569_s21  ;;  %v4883_v61 = vrot.slane %v3009_v16, %v3732_v8  ;;  %v877_v19 = vsel %vm548_vm4, %v876_v20, %v4745_v36  ;;  %v2672_v54 = vcombine.high %v2662_v33, %v5205_v25  ;;  %v5222_v59 = vld [vmem:[#allocation10_spill] sm:$0xff]  ;;  %v2655_v36 = vcombine.high %v4838_v6, %v4832_v18  ;;  %v5223_v16 = vld [vmem:[#allocation11_spill] sm:$0xff] }
 0x1d3   : > { %v866_v41 = vpop.permute.xlu0 %865  ;;  %v830_v0 = vpop.permute.xlu1 %829  ;;  %v1201_v3 = vsel %vm546_vm2, %v5222_v59, %v1168_v38  ;;  %v4914_v38 = vrot.slane %v2941_v32, %v3732_v8  ;;  %v2989_v18 = vcombine.high %v2971_v13, %v5205_v25 }
 0x1d4   : > { %v887_v31 = vsel %vm554_vm6, %v886_v14, %v866_v41  ;;  %v878_v17 = vsel %vm550_vm3, %v877_v19, %v830_v0  ;;  %v4905_v41 = vrot.slane %v2925_v30, %v3732_v8  ;;  %v3040_v48 = vcombine.low %v4880_v56, %v4883_v61 }
 0x1d5   : > { %2787 = vrot.lane.b32.xlu0 %v2740_v52, %s3573_s30  ;;  %v888_v29 = vsel %vm556_vm7, %v887_v31, %v4788_v58  ;;  %v1530_v58 = vsel %vm550_vm3, %v1529_v60, %v4666_v47  ;;  %v1522_v52 = vsel %vm548_vm4, %v1521_v28, %v4608_v1  ;;  %v1202_v6 = vsel %vm548_vm4, %v1201_v3, %v4768_v43 }
 0x1d6   : > { %2755 = vrot.lane.b32.xlu1 %v2662_v33, %s3568_s14  ;;  %v1523_v47 = vsel %vm550_vm3, %v1522_v52, %v4677_v37  ;;  %v879_v0 = vsel %vm552_vm5, %v878_v17, %v4757_v10  ;;  %v2737_v8 = vrot.slane %v2723_v34, %v4024_v63  ;;  %v1531_v5 = vsel %vm552_vm5, %v1530_v58, %v4638_v35 }
 0x1d7   : > { %v1176_v46 = vpop.permute.xlu0 %1175  ;;  %v1140_v55 = vpop.permute.xlu1 %1139  ;;  %v1532_v43 = vsel %vm554_vm6, %v1531_v5, %v4675_v26  ;;  %v2972_v10 = vcombine.low %v4905_v41, %v4914_v38  ;;  %v1524_v42 = vsel %vm552_vm5, %v1523_v47, %v4627_v49  ;;  %v2669_v35 = vrot.slane %v2655_v36, %v4024_v63 }
 0x1d8   : > { %v1203_v1 = vsel %vm550_vm3, %v1202_v6, %v1176_v46  ;;  %v1194_v14 = vsel %vm546_vm2, %v5223_v16, %v1140_v55  ;;  %v3048_v46 = vrot.slane %v3040_v48, %v4024_v63  ;;  %v1525_v20 = vsel %vm554_vm6, %v1524_v42, %v4695_v50 }
 0x1d9   : > { %3097 = vrot.lane.b32.xlu0 %v3057_v39, %s3572_s26  ;;  %v1204_v26 = vsel %vm552_vm5, %v1203_v1, %v4804_v21  ;;  %v1195_v31 = vsel %vm548_vm4, %v1194_v14, %v4770_v51  ;;  %v1533_v49 = vsel %vm556_vm7, %v1532_v43, %v4655_v27  ;;  %v3373_v21 = vld [vmem:[%s5177_s2 + $0x8] sm:$0xff]  ;;  %v1526_v27 = vsel %vm556_vm7, %v1525_v20, %v4640_v45 }
 0x1da   : > { %3065 = vrot.lane.b32.xlu1 %v2971_v13, %s3570_s22  ;;  %v1534_v51 = vsel %vm558_vm8, %v1533_v49, %v4693_v7  ;;  %v2980_v32 = vrot.slane %v2972_v10, %v4024_v63  ;;  %v3058_v3 = vcombine.high %v3048_v46, %v5205_v25  ;;  %s251_s22 = scalar_lea.vmem [#allocation3], %s3365_s13 }
 0x1db   : > { %v874_v62 = vpop.permute.xlu0 %873  ;;  %v838_v23 = vpop.permute.xlu1 %837  ;;  %s3247_s24 = sshll.u32 %s251_s22, 4  ;;  %s3248_s24 = int_to_ptr.vmem [resolvable:$true] %s3247_s24 }
 0x1dc   : > { %v889_v11 = vsel %vm558_vm8, %v888_v29, %v874_v62  ;;  %v880_v39 = vsel %vm554_vm6, %v879_v0, %v838_v23  ;;  %v3377_v29 = vld [vmem:[%s5177_s2 + $0x10] sm:$0xff]  ;;  %v2990_v23 = vcombine.high %v2980_v32, %v5205_v25 }
 0x1dd   : > { %2759 = vrot.lane.b32.xlu0 %v2672_v54, %s3573_s30  ;;  %3374 = vmatprep.subr.msk.mxu1 %vm572_vm9, %v889_v11  ;;  %v881_v13 = vsel %vm556_vm7, %v880_v39, %v4790_v22  ;;  %v1527_v22 = vsel %vm558_vm8, %v1526_v27, %v4705_v12  ;;  %v2741_v12 = vcombine.high %v2737_v8, %v5205_v25 }
 0x1de   : > { %2449 = vrot.lane.b32.xlu1 %v2355_v9, %s3574_s5  ;;  %v2673_v54 = vcombine.high %v2669_v35, %v5205_v25 }
 0x1df   : > { %v1184_v33 = vpop.permute.xlu0 %1183  ;;  %v1148_v37 = vpop.permute.xlu1 %1147 }
 0x1e0   : > { %v1205_v30 = vsel %vm554_vm6, %v1204_v26, %v1184_v33  ;;  %v1196_v57 = vsel %vm550_vm3, %v1195_v31, %v1148_v37 }
 0x1e1   : > { %3069 = vrot.lane.b32.xlu0 %v2989_v18, %s3572_s26  ;;  %v1197_v9 = vsel %vm552_vm5, %v1196_v57, %v4806_v2  ;;  %v1206_v7 = vsel %vm556_vm7, %v1205_v30, %v4815_v53  ;;  %v3381_v2 = vld [vmem:[%s5177_s2 + $0x18] sm:$0xff]  ;;  %v3041_v53 = vcombine.high %v4880_v56, %v4883_v61  ;;  %v2973_v61 = vcombine.high %v4905_v41, %v4914_v38 }
 0x1e2   : > { %2791 = vrot.lane.b32.xlu1 %v2737_v8, %s3569_s21 }
 0x1e3   : > { %v846_v55 = vpop.permute.xlu0 %845  ;;  %v1156_v44 = vpop.permute.xlu1 %1155  ;;  %v3055_v56 = vrot.slane %v3041_v53, %v4024_v63  ;;  %v2987_v48 = vrot.slane %v2973_v61, %v4024_v63 }
 0x1e4   : > { %v882_v50 = vsel %vm558_vm8, %v881_v13, %v846_v55  ;;  %v1198_v45 = vsel %vm554_vm6, %v1197_v9, %v1156_v44  ;;  %v5224_v9 = vld [vmem:[#allocation12_spill] sm:$0xff] }
 0x1e5   : > { %2763 = vrot.lane.b32.xlu0 %v2669_v35, %s3569_s21  ;;  %3375 = vmatpush1.msk.msra.mxu1 %vm572_vm9, %v882_v50  ;;  %v1199_v62 = vsel %vm556_vm7, %v1198_v45, %v4817_v40  ;;  %v3059_v36 = vcombine.high %v3055_v56, %v5205_v25  ;;  %v2991_v18 = vcombine.high %v2987_v48, %v5205_v25  ;;  %v3385_v50 = vld [vmem:[%s5177_s2 + $0x20] sm:$0xff] }
 0x1e6   : > { %3101 = vrot.lane.b32.xlu1 %v3048_v46, %s3568_s14  ;;  %3382 = vmatprep.subr.msk.mxu1 %vm572_vm9, %v1534_v51 }
 0x1e7   : > { %v1192_v34 = vpop.permute.xlu0 %1191  ;;  %3376 = vmatmul.mubr.msk.f32.vlgmr.msra.gmra.mxu1 %vm568_vm10, %v3373_v21  ;;  %v1789_v28 = vpop.permute.xlu1 %1788 }
 0x1e8   : > { %v1207_v24 = vsel %vm558_vm8, %v1206_v7, %v1192_v34  ;;  %3383 = vmatpush1.msk.msra.mxu1 %vm572_vm9, %v1527_v22  ;;  %1610 = vmatprep.mubr.f32.mxu1 %v5205_v25 }
 0x1e9   : > { %3073 = vrot.lane.b32.xlu0 %v2980_v32, %s3568_s14  ;;  %3378 = vmatprep.subr.msk.mxu0 %vm572_vm9, %v1207_v24  ;;  %s3367_s14 = sshll.u32 %s3658_s29, 3 }
 0x1ea   : > { %2795 = vrot.lane.b32.xlu1 %v2741_v12, %s3574_s5  ;;  %s262_s26 = scalar_lea.vmem %s5176_s1, %s3367_s14  ;;  %s3410_s14 = sshll.u32 %s3551_s18, 8 }
 0x1eb   : > { %v1164_v19 = vpop.permute.xlu0 %1163  ;;  %3384 = vmatmul.mubr.msk.f32.vlgmr.msra.gmra.mxu1 %vm568_vm10, %v3381_v2  ;;  %v1797_v59 = vpop.permute.xlu1 %1796  ;;  %v3218_v41 = vld [vmem:[%s262_s26] sm:$0xff]  ;;  %s3487_s18 = sshll.u32 %s3575_s6, 4  ;;  %s3488_s18 = int_to_ptr.vmem [resolvable:$false] %s3487_s18 }
 0x1ec   : > { %v1200_v60 = vsel %vm558_vm8, %v1199_v62, %v1164_v19  ;;  %2246 = vmatprep.mubr.f32.mxu1 %v5205_v25  ;;  %s3489_s7 = scalar_lea.vmem %s3488_s18, 512  ;;  %p3490_p1 = scmp.lt.s32.totalorder %s3248_s24, %s3488_s18 }
 0x1ed   : > { %2767 = vrot.lane.b32.xlu0 %v2673_v54, %s3574_s5  ;;  %3379 = vmatpush1.msk.msra.mxu0 %vm572_vm9, %v1200_v60  ;;  %v5225_v60 = vld [vmem:[#allocation13_spill] sm:$0xff] }
 0x1ee   : > { %3105 = vrot.lane.b32.xlu1 %v3058_v3, %s3573_s30  ;;  %3380 = vmatmul.mubr.msk.f32.vlgmr.msra.gmra.mxu0 %vm568_vm10, %v3377_v29 }
 0x1ef   : > { %v1817_v40 = vpop.permute.xlu0 %1816  ;;  %1928 = vmatprep.mubr.f32.mxu0 %v5205_v25  ;;  %v5006_v17 = vpop.permute.xlu1 %2106 }
 0x1f1   : > { %3109 = vrot.lane.b32.xlu0 %v3055_v56, %s3569_s21 }
 0x1f2   : > { %3077 = vrot.lane.b32.xlu1 %v2990_v23, %s3573_s30  ;;  %s3231_s30 = scalar_lea.sflag [#allocation4], %s249_s12 }
 0x1f3   : > { %v1825_v11 = vpop.permute.xlu0 %1824  ;;  %v1805_v58 = vpop.permute.xlu1 %1804 }
 0x1f5   : > { %3113 = vrot.lane.b32.xlu0 %v3059_v36, %s3574_s5 }
 0x1f6   : > { %3081 = vrot.lane.b32.xlu1 %v2987_v48, %s3569_s21  ;;  %s3245_s21 = scalar_lea.hbm %s5179_s4, %s3410_s14 }
 0x1f7   : > { %v2135_v38 = vpop.permute.xlu0 %2134  ;;  %v5019_v52 = vpop.permute.xlu1 %2114 }
 0x1f9   : > { %3223 = vperm.xlu0 %3481, %v3218_v41  }
 0x1fa   : > { %3085 = vrot.lane.b32.xlu1 %v2991_v18, %s3574_s5  ;;  %s3483_s5 = scalar_lea.vmem %s3248_s24, 256 }
 0x1fb   : > { %v1833_v47 = vpop.permute.xlu0 %1832  ;;  %p3484_p12 = scmp.ne.s32.totalorder %s3248_s24, %s3483_s5  ;;  %p3491_p2 = scmp.lt.s32.totalorder %s3489_s7, %s3483_s5 }
 0x1fc   : > { %v1813_v6 = vpop.permute.xlu1 %1812 }
 0x1fd   : > { %v1846_v63 = vsel %vm546_vm2, %v4569_v4, %v1813_v6  ;;  %p3485_p13 = pnand %p3484_p12, %p3641_p4  ;;  %p3492_p3 = por %p3491_p2, %p3490_p1 }
 0x1fe   : > { %v1847_v1 = vsel %vm548_vm4, %v1846_v63, %v1817_v40  ;;  %v5226_v63 = vld [vmem:[#allocation16_spill] sm:$0xff] }
 0x1ff   : > { %v2143_v0 = vpop.permute.xlu0 %2142  ;;  %p3486_p0 = pneg %p3485_p13 }
 0x200   : > { %v1785_v33 = vpop.permute.xlu1 %1784 }
 0x201   : > { %v1839_v10 = vsel %vm546_vm2, %v4603_v15, %v1785_v33  ;;  %p3493_p5 = pnand %p3492_p3, %p3486_p0 }
 0x202   : > { %v1840_v46 = vsel %vm548_vm4, %v1839_v10, %v1789_v28 }
 0x203   : > { %v1821_v8 = vpop.permute.xlu0 %1820 }
 0x204   : > { %v2131_v5 = vpop.permute.xlu1 %2130  ;;  %v1848_v14 = vsel %vm550_vm3, %v1847_v1, %v1821_v8 }
 0x205   : > { %v1849_v37 = vsel %vm552_vm5, %v1848_v14, %v1825_v11  ;;  %v2164_v7 = vsel %vm546_vm2, %v5224_v9, %v2131_v5 }
 0x206   : > { %v2165_v45 = vsel %vm548_vm4, %v2164_v7, %v2135_v38  ;;  %v3389_v38 = vld [vmem:[%s5177_s2 + $0x28] sm:$0xff] }
 0x207   : > { %v1829_v16 = vpop.permute.xlu0 %1828  ;;  %v5229_v7 = vld [vmem:[#allocation15_spill] sm:$0xff] }
 0x208   : > { %v1793_v39 = vpop.permute.xlu1 %1792  ;;  %v1850_v42 = vsel %vm554_vm6, %v1849_v37, %v1829_v16 }
 0x209   : > { %v1851_v4 = vsel %vm556_vm7, %v1850_v42, %v1833_v47  ;;  %v1841_v26 = vsel %vm550_vm3, %v1840_v46, %v1793_v39  ;;  %v5227_v46 = vld [vmem:[#allocation17_spill] sm:$0xff] }
 0x20a   : > { %v1842_v13 = vsel %vm552_vm5, %v1841_v26, %v1797_v59 }
 0x20b   : > { %v2139_v43 = vpop.permute.xlu0 %2138 }
 0x20c   : > { %v2103_v35 = vpop.permute.xlu1 %2102  ;;  %v2166_v24 = vsel %vm550_vm3, %v2165_v45, %v2139_v43 }
 0x20d   : > { %v2167_v2 = vsel %vm552_vm5, %v2166_v24, %v2143_v0  ;;  %v2157_v59 = vsel %vm546_vm2, %v5225_v60, %v2103_v35 }
 0x20e   : > { %v2158_v56 = vsel %vm548_vm4, %v2157_v59, %v5006_v17 }
 0x20f   : > { %v1837_v20 = vpop.permute.xlu0 %1836 }
 0x210   : > { %v1852_v31 = vsel %vm558_vm8, %v1851_v4, %v1837_v20  ;;  %v1801_v55 = vpop.permute.xlu1 %1800 }
 0x211   : > { %3386 = vmatprep.subr.msk.mxu0 %vm572_vm9, %v1852_v31  ;;  %v1843_v15 = vsel %vm554_vm6, %v1842_v13, %v1801_v55 }
 0x212   : > { %v1844_v44 = vsel %vm556_vm7, %v1843_v15, %v1805_v58 }
 0x213   : > { %v2147_v49 = vpop.permute.xlu0 %2146 }
 0x214   : > { %v2111_v30 = vpop.permute.xlu1 %2110  ;;  %v2168_v53 = vsel %vm554_vm6, %v2167_v2, %v2147_v49  ;;  %v3393_v49 = vld [vmem:[%s5177_s2 + $0x30] sm:$0xff] }
 0x215   : > { %v2159_v61 = vsel %vm550_vm3, %v2158_v56, %v2111_v30 }
 0x216   : > { %v2160_v36 = vsel %vm552_vm5, %v2159_v61, %v5019_v52 }
 0x217   : > { %v1809_v57 = vpop.permute.xlu0 %1808 }
 0x218   : > { %v1845_v21 = vsel %vm558_vm8, %v1844_v44, %v1809_v57  ;;  %v5043_v51 = vpop.permute.xlu1 %2771  ;;  %v5228_v44 = vld [vmem:[#allocation14_spill] sm:$0xff] }
 0x219   : > { %3387 = vmatpush1.msk.msra.mxu0 %vm572_vm9, %v1845_v21 }
 0x21a   : > { %3388 = vmatmul.mubr.msk.f32.vlgmr.msra.gmra.mxu0 %vm568_vm10, %v3385_v50  ;;  %v2805_v50 = vsel %vm546_vm2, %v5228_v44, %v5043_v51 }
 0x21b   : > { %v2151_v27 = vpop.permute.xlu0 %2150  ;;  %2569 = vmatprep.mubr.f32.mxu0 %v5205_v25 }
 0x21c   : > { %v2119_v22 = vpop.permute.xlu1 %2118  ;;  %v2169_v19 = vsel %vm556_vm7, %v2168_v53, %v2151_v27 }
 0x21d   : > { %v2161_v58 = vsel %vm554_vm6, %v2160_v36, %v2119_v22 }
 0x21f   : > { %v2466_v34 = vpop.permute.xlu0 %2465 }
 0x220   : > { %v2434_v32 = vpop.permute.xlu1 %2433  ;;  %v2490_v5 = vsel %vm552_vm5, %v5226_v63, %v2466_v34 }
 0x221   : > { %v2482_v20 = vsel %vm550_vm3, %v5227_v46, %v2434_v32 }
 0x223   : > { %v2776_v28 = vpop.permute.xlu0 %2775 }
 0x224   : > { %v2744_v12 = vpop.permute.xlu1 %2743  ;;  %v2806_v27 = vsel %vm548_vm4, %v2805_v50, %v2776_v28 }
 0x225   : > { %v2798_v34 = vsel %vm546_vm2, %v5229_v7, %v2744_v12 }
 0x227   : > { %v2155_v62 = vpop.permute.xlu0 %2154 }
 0x228   : > { %v2170_v54 = vsel %vm558_vm8, %v2169_v19, %v2155_v62  ;;  %v2123_v29 = vpop.permute.xlu1 %2122 }
 0x229   : > { %3390 = vmatprep.subr.msk.mxu1 %vm572_vm9, %v2170_v54  ;;  %v2162_v48 = vsel %vm556_vm7, %v2161_v58, %v2123_v29  ;;  %v3397_v29 = vld [vmem:[%s5177_s2 + $0x38] sm:$0xff] }
 0x22b   : > { %v2470_v3 = vpop.permute.xlu0 %2469 }
 0x22c   : > { %v2438_v40 = vpop.permute.xlu1 %2437  ;;  %v2491_v1 = vsel %vm554_vm6, %v2490_v5, %v2470_v3  ;;  %v5230_v3 = vld [vmem:[#allocation18_spill] sm:$0xff] }
 0x22d   : > { %v2483_v4 = vsel %vm552_vm5, %v2482_v20, %v2438_v40 }
 0x22f   : > { %v2780_v23 = vpop.permute.xlu0 %2779 }
 0x230   : > { %v2748_v11 = vpop.permute.xlu1 %2747  ;;  %v2807_v9 = vsel %vm550_vm3, %v2806_v27, %v2780_v23 }
 0x231   : > { %v2799_v45 = vsel %vm548_vm4, %v2798_v34, %v2748_v11 }
 0x233   : > { %v2127_v41 = vpop.permute.xlu0 %2126 }
 0x234   : > { %v2163_v18 = vsel %vm558_vm8, %v2162_v48, %v2127_v41  ;;  %v3090_v47 = vpop.permute.xlu1 %3089  ;;  %v5231_v48 = vld [vmem:[#allocation19_spill] sm:$0xff] }
 0x235   : > { %3391 = vmatpush1.msk.msra.mxu1 %vm572_vm9, %v2163_v18  ;;  %v3123_v40 = vsel %vm546_vm2, %v5230_v3, %v3090_v47 }
 0x236   : > { %3392 = vmatmul.mubr.msk.f32.vlgmr.msra.gmra.mxu1 %vm568_vm10, %v3389_v38 }
 0x237   : > { %v2474_v17 = vpop.permute.xlu0 %2473  ;;  %2887 = vmatprep.mubr.f32.mxu1 %v5205_v25 }
 0x238   : > { %v2442_v52 = vpop.permute.xlu1 %2441  ;;  %v2492_v16 = vsel %vm556_vm7, %v2491_v1, %v2474_v17 }
 0x239   : > { %v2484_v26 = vsel %vm554_vm6, %v2483_v4, %v2442_v52 }
 0x23b   : > { %v2784_v6 = vpop.permute.xlu0 %2783 }
 0x23c   : > { %v2752_v0 = vpop.permute.xlu1 %2751  ;;  %v2808_v32 = vsel %vm552_vm5, %v2807_v9, %v2784_v6 }
 0x23d   : > { %v2800_v2 = vsel %vm550_vm3, %v2799_v45, %v2752_v0 }
 0x23f   : > { %v3094_v33 = vpop.permute.xlu0 %3093 }
 0x240   : > { %v3062_v8 = vpop.permute.xlu1 %3061  ;;  %v3124_v56 = vsel %vm548_vm4, %v3123_v40, %v3094_v33 }
 0x241   : > { %v3116_v41 = vsel %vm546_vm2, %v5231_v48, %v3062_v8  ;;  %v3401_v8 = vld [vmem:[%s5177_s2 + $0x40] sm:$0xff] }
 0x243   : > { %v2478_v14 = vpop.permute.xlu0 %2477 }
 0x244   : > { %v2493_v39 = vsel %vm558_vm8, %v2492_v16, %v2478_v14  ;;  %v2446_v37 = vpop.permute.xlu1 %2445 }
 0x245   : > { %3394 = vmatprep.subr.msk.mxu0 %vm572_vm9, %v2493_v39  ;;  %v2485_v55 = vsel %vm556_vm7, %v2484_v26, %v2446_v37 }
 0x247   : > { %v2788_v43 = vpop.permute.xlu0 %2787 }
 0x248   : > { %v2756_v10 = vpop.permute.xlu1 %2755  ;;  %v2809_v24 = vsel %vm554_vm6, %v2808_v32, %v2788_v43 }
 0x249   : > { %v2801_v28 = vsel %vm552_vm5, %v2800_v2, %v2756_v10 }
 0x24b   : > { %v3098_v42 = vpop.permute.xlu0 %3097 }
 0x24c   : > { %v3066_v35 = vpop.permute.xlu1 %3065  ;;  %v3125_v23 = vsel %vm550_vm3, %v3124_v56, %v3098_v42 }
 0x24d   : > { %v3117_v47 = vsel %vm548_vm4, %v3116_v41, %v3066_v35 }
 0x24e   : > { %v645_v16 = vpop.f32.mrf.mxu0 }
 0x24f   : > { %v2760_v31 = vpop.permute.xlu0 %2759 }
 0x250   : > { %v2450_v13 = vpop.permute.xlu1 %2449  ;;  %v2802_v62 = vsel %vm554_vm6, %v2801_v28, %v2760_v31  ;;  %v647_v14 = vpop.f32.mrf.mxu0 }
 0x251   : > { %v2486_v15 = vsel %vm558_vm8, %v2485_v55, %v2450_v13 }
 0x252   : > { %3395 = vmatpush1.msk.msra.mxu0 %vm572_vm9, %v2486_v15 }
 0x253   : > { %v3070_v30 = vpop.permute.xlu0 %3069  ;;  %3396 = vmatmul.mubr.msk.f32.vlgmr.msra.gmra.mxu0 %vm568_vm10, %v3393_v49 }
 0x254   : > { %v2792_v57 = vpop.permute.xlu1 %2791  ;;  %3205 = vmatprep.mubr.f32.mxu0 %v5205_v25  ;;  %v3118_v6 = vsel %vm550_vm3, %v3117_v47, %v3070_v30 }
 0x255   : > { %v2810_v51 = vsel %vm556_vm7, %v2809_v24, %v2792_v57 }
 0x257   : > { %v2764_v21 = vpop.permute.xlu0 %2763 }
 0x258   : > { %v3102_v22 = vpop.permute.xlu1 %3101  ;;  %v2803_v12 = vsel %vm556_vm7, %v2802_v62, %v2764_v21 }
 0x259   : > { %v3126_v36 = vsel %vm552_vm5, %v3125_v23, %v3102_v22 }
 0x25b   : > { %v3074_v25 = vpop.permute.xlu0 %3073 }
 0x25c   : > { %v2796_v53 = vpop.permute.xlu1 %2795  ;;  %v3119_v0 = vsel %vm552_vm5, %v3118_v6, %v3074_v25 }
 0x25d   : > { %v2811_v19 = vsel %vm558_vm8, %v2810_v51, %v2796_v53 }
 0x25e   : > { %3398 = vmatprep.subr.msk.mxu1 %vm572_vm9, %v2811_v19 }
 0x25f   : > { %v2768_v54 = vpop.permute.xlu0 %2767 }
 0x260   : > { %v2804_v60 = vsel %vm558_vm8, %v2803_v12, %v2768_v54  ;;  %v3106_v59 = vpop.permute.xlu1 %3105 }
 0x261   : > { %3399 = vmatpush1.msk.msra.mxu1 %vm572_vm9, %v2804_v60  ;;  %v3127_v58 = vsel %vm554_vm6, %v3126_v36, %v3106_v59 }
 0x262   : > { %3400 = vmatmul.mubr.msk.f32.vlgmr.msra.gmra.mxu1 %vm568_vm10, %v3397_v29 }
 0x263   : > { %v3110_v61 = vpop.permute.xlu0 %3109 }
 0x264   : > { %v3078_v11 = vpop.permute.xlu1 %3077  ;;  %v3128_v38 = vsel %vm556_vm7, %v3127_v58, %v3110_v61 }
 0x265   : > { %v3120_v33 = vsel %vm554_vm6, %v3119_v0, %v3078_v11 }
 0x267   : > { %v3114_v18 = vpop.permute.xlu0 %3113 }
 0x268   : > { %v3129_v17 = vsel %vm558_vm8, %v3128_v38, %v3114_v18  ;;  %v3082_v52 = vpop.permute.xlu1 %3081 }
 0x269   : > { %3402 = vmatprep.subr.msk.mxu0 %vm572_vm9, %v3129_v17  ;;  %v3121_v63 = vsel %vm556_vm7, %v3120_v33, %v3082_v52 }
 0x26c   : > { %v3086_v5 = vpop.permute.xlu1 %3085 }
 0x26d   : > { %v3122_v1 = vsel %vm558_vm8, %v3121_v63, %v3086_v5 }
 0x26e   : > { %3403 = vmatpush1.msk.msra.mxu0 %vm572_vm9, %v3122_v1 }
 0x26f   : > { %3404 = vmatmul.mubr.msk.f32.vlgmr.msra.gmra.mxu0 %vm568_vm10, %v3401_v8 }
 0x274   : > { %v3224_v51 = vpop.permute.xlu0 %3223 }
 0x2a7   : > { %v967_v39 = vpop.f32.mrf.mxu1 }
 0x2a8   : > { %v974_v10 = vadd.f32 %v967_v39, %v645_v16 }
 0x2a9   : > { %v969_v37 = vpop.f32.mrf.mxu1 }
 0x2aa   : > { %v975_v42 = vadd.f32 %v969_v37, %v647_v14 }
 0x2ab   : > { %v1612_v46 = vpop.f32.mrf.mxu1 }
 0x2ad   : > { %v1614_v26 = vpop.f32.mrf.mxu1 }
 0x2ae   : > { %v1285_v43 = vpop.f32.mrf.mxu0 }
 0x2af   : > { %v1292_v20 = vadd.f32 %v1285_v43, %v974_v10 }
 0x2b0   : > { %v1287_v35 = vpop.f32.mrf.mxu0 }
 0x2b1   : > { %v1293_v4 = vadd.f32 %v1287_v35, %v975_v42  ;;  %v1619_v55 = vadd.f32 %v1612_v46, %v1292_v20 }
 0x2b3   : > { %v1620_v13 = vadd.f32 %v1614_v26, %v1293_v4 }
 0x2da   : > { %v1930_v31 = vpop.f32.mrf.mxu0 }
 0x2db   : > { %v1937_v30 = vadd.f32 %v1930_v31, %v1619_v55 }
 0x2dc   : > { %v1932_v49 = vpop.f32.mrf.mxu0 }
 0x2dd   : > { %v1938_v57 = vadd.f32 %v1932_v49, %v1620_v13 }
 0x2f6   : > { %v2248_v15 = vpop.f32.mrf.mxu1 }
 0x2f7   : > { %v2255_v21 = vadd.f32 %v2248_v15, %v1937_v30 }
 0x2f8   : > { %v2250_v44 = vpop.f32.mrf.mxu1 }
 0x2f9   : > { %v2256_v27 = vadd.f32 %v2250_v44, %v1938_v57 }
 0x313   : > { %v2571_v50 = vpop.f32.mrf.mxu0 }
 0x314   : > { %v2578_v7 = vadd.f32 %v2571_v50, %v2255_v21 }
 0x315   : > { %v2573_v22 = vpop.f32.mrf.mxu0 }
 0x316   : > { %v2579_v34 = vadd.f32 %v2573_v22, %v2256_v27 }
 0x322   : > { %v2889_v9 = vpop.f32.mrf.mxu1 }
 0x323   : > { %v2896_v45 = vadd.f32 %v2889_v9, %v2578_v7 }
 0x324   : > { %v2891_v32 = vpop.f32.mrf.mxu1 }
 0x325   : > { %v2897_v25 = vadd.f32 %v2891_v32, %v2579_v34 }
 0x32f   : > { %v3207_v24 = vpop.f32.mrf.mxu0 }
 0x330   : > { %v3214_v2 = vadd.f32 %v3207_v24, %v2896_v45 }
 0x331   : > { %v3209_v53 = vpop.f32.mrf.mxu0 }
 0x332   : > { %v3226_v28 = vmul.f32 %v3224_v51, %v3214_v2  ;;  %v3215_v19 = vadd.f32 %v3209_v53, %v2897_v25 }
 0x334   : > { %3228 = vst [vmem:[%s251_s22] sm:$0xff] %v3226_v28  ;;  %v3227_v62 = vmul.f32 %v3224_v51, %v3215_v19 }
 0x336   : > { %3229 = vst [vmem:[%s251_s22 + $0x8] sm:$0xff] %v3227_v62 }
 0x337   : > { %3496 = shalt.err (!%p3493_p5)
}
 0x338   : > { %s3497_s8 = scalar_lea.hbm %s3245_s21, 256  ;;  %s3501_s11 = scalar_lea.hbm %s5179_s4, 512 }
 0x339   : > { %p3498_p6 = scmp.ne.s32.totalorder %s3245_s21, %s3497_s8  ;;  %p3502_p10 = scmp.lt.s32.totalorder %s3245_s21, %s5179_s4 }
 0x33a   : > { %p3503_p11 = scmp.lt.s32.totalorder %s3501_s11, %s3497_s8 }
 0x33b   : > { %p3499_p7 = pnand %p3498_p6, %p3641_p4 }
 0x33c   : > { %p3504_p12 = por %p3503_p11, %p3502_p10 }
 0x33d   : > { %p3500_p9 = pneg %p3499_p7 }
 0x33f   : > { %p3505_p13 = pnand %p3504_p12, %p3500_p9 }
 0x341   : > { %3508 = shalt.err (!%p3505_p13)
}
 0x342   : > { %3412 = dma.vmem_to_hbm [thread:$0]  (%p3641_p4), %s3248_s24, 256, %s3245_s21, %s3231_s30  }
 0x343 PF: > { %p3418_p0 = scmp.ge.s32.totalorder %s3559_s20, 2  ;;  %s3259_s14 = sand.u32 1, %s3539_s15  }
 0x344   : > { %s3260_s22 = scalar_lea.sflag [#allocation4], %s3259_s14 }
 0x345   : > { %p3415_p1 = pnand %p3418_p0, %p3648_p8 }
 0x347   : > { %p3416_p2 = pneg %p3415_p1 }
 0x349   : > { %3534 = dma.done.wait (%p3416_p2), %s3260_s22, 256  }
 0x34a   : > { %3536 = vsyncadd (%p3416_p2), %s3260_s22, 4294967040  ;;  %s17_s20 = sadd.s32 1, %s3559_s20   ;;  %s5232_s15 = smov %s3543_s16 }
 0x34b   : > { %p14_p3 = scmp.ge.s32.totalorder %s17_s20, 4   ;;  %s5233_s16 = smov %s3547_s17 }
 0x34c   : > { %s5234_s17 = smov %s3654_s28  ;;  %s5235_s18 = smov %s3555_s19 }
 0x34d   : > { %s5236_s19 = smov %s5238_s23  ;;  %16 = sbr.rel (!%p14_p3) target bundleno = 4 (0x4), region = 88 }
 0x352   :  { %3265 = vsyncpa [#allocation4], 1 }
 0x353   :  { %3267 = vsyncpa [#allocation4 + $0x1], 1 }

</bundles_post_ra>
